<compile_context>
chip_gen: v6e
topology: v6e:2x2x1
jax: 0.10.0
libtpu: 0.0.40
codegen_flags: <defaults>
</compile_context>

<pallas_src>
import math
import numpy as np
import jax
import jax.numpy as jnp
from jax.experimental import pallas as pl
from jax.experimental.pallas import tpu as pltpu

# ---- module configuration -------------------------------------------------
N_SCALARS_IN = 32
MUL_IN = 8
N_SCALARS_OUT = 16
MUL_OUT = 4
L_DIM = 3                                   # 2l+1 for l=1
HIDDEN = 64
D_IN = N_SCALARS_IN + MUL_IN * L_DIM        # 56
D_OUT = N_SCALARS_OUT + MUL_OUT * L_DIM     # 28
W_NUMEL = MUL_IN * MUL_OUT                  # 32 = eq_readout.weight_numel
EPS = 1e-5                                  # torch.nn.LayerNorm default
EQ_NORM = 1.0 / math.sqrt(MUL_IN)           # e3nn path normalization (fan_in = mul_in)

H_FUSED = 2 * HIDDEN                        # 128 : inv hidden | weights hidden
D_MIX = N_SCALARS_OUT + W_NUMEL * L_DIM     # 112 : gate/inv (16) | (u,v,m) product (96)
D_BIG = H_FUSED + D_MIX                     # 240 : merged first-matmul width

TM_MAX = 2048                               # node tile upper bound (multiple of 8)
TM_SPLIT_THRESHOLD = 512                    # below this keep a single tile


def _round_up(x, m):
    return ((x + m - 1) // m) * m


# ---- structured constant matrices (built once, numpy, exact 0/1) -----------
def _structured_mats():
    # Q    : [32, 96]  expand per-node weights w[u*4+v]  -> column u*12 + v*3 + m
    # R_EQ : [24, 96]  expand eq features      eq[u*3+m] -> column u*12 + v*3 + m
    # T    : [112, 28] identity on the 16 inv columns; sum over u of the 96
    #                  product columns -> output column 16 + v*3 + m
    q = np.zeros((W_NUMEL, W_NUMEL * L_DIM), np.float32)
    r_eq = np.zeros((MUL_IN * L_DIM, W_NUMEL * L_DIM), np.float32)
    t = np.zeros((D_MIX, D_OUT), np.float32)
    for j in range(N_SCALARS_OUT):
        t[j, j] = 1.0
    for u in range(MUL_IN):
        for v in range(MUL_OUT):
            for m in range(L_DIM):
                col = u * (MUL_OUT * L_DIM) + v * L_DIM + m       # 0..95
                q[u * MUL_OUT + v, col] = 1.0
                r_eq[u * L_DIM + m, col] = 1.0
                t[N_SCALARS_OUT + col, N_SCALARS_OUT + v * L_DIM + m] = 1.0
    return q, r_eq, t


_Q_NP, _R_EQ_NP, _T_NP = _structured_mats()


# ---- Pallas kernel ----------------------------------------------------------
def readout_kernel(x_ref, wbig_ref, bbig_ref, w2_ref, t_ref, out_ref):
    x = x_ref[...]                                   # [tm, 56] f32
    scal = x[:, :N_SCALARS_IN]                       # [tm, 32]

    # Shared one-pass LayerNorm statistics (both branches normalize the same
    # scalars; the per-branch affine g/b is folded into wbig/bbig in the wrapper).
    mu = jnp.mean(scal, axis=-1, keepdims=True)
    var = jnp.maximum(jnp.mean(scal * scal, axis=-1, keepdims=True) - mu * mu, 0.0)
    rstd = jax.lax.rsqrt(var + EPS)

    # Splice normalized scalars into lanes 0..31; eq lanes pass through raw.
    lane = jax.lax.broadcasted_iota(jnp.int32, (1, D_IN), 1)
    lhs = jnp.where(lane < N_SCALARS_IN, (x - mu) * rstd, x)   # [tm, 56]

    # Merged matmul (bf16 operands, f32 accumulate):
    #   cols   0..127 : fused first linear of both MLP branches (pre-SiLU)
    #   cols 128..143 : gate ones (from the bias) so inv passes through the multiply
    #   cols 144..239 : eq features expanded to the (u,v,m) product layout
    hm = jnp.dot(lhs.astype(jnp.bfloat16), wbig_ref[...],
                 preferred_element_type=jnp.float32) + bbig_ref[...]   # [tm, 240]
    h = hm[:, :H_FUSED]                              # [tm, 128]
    h = h * jax.nn.sigmoid(h)                        # SiLU over full 128 lanes
    mix = hm[:, H_FUSED:]                            # [tm, 112] = [ones 16 | eq_exp 96]

    # Block-diagonal second linear: [ inv_out (16) | EQ_NORM * per-node eq weights (96) ]
    h2 = jnp.dot(h.astype(jnp.bfloat16), w2_ref[...],
                 preferred_element_type=jnp.float32)               # [tm, 112]

    # Single 0/1 reduction matmul -> [ inv (16) | sum_u eq product (12) ].
    out_ref[...] = jnp.dot((h2 * mix).astype(jnp.bfloat16), t_ref[...],
                           preferred_element_type=jnp.float32)


# ---- wrapper ----------------------------------------------------------------
def _fuse_params(params):
    g_inv = params["g_inv"].reshape(-1, 1)           # [32, 1]
    g_w = params["g_w"].reshape(-1, 1)

    # Merged first matmul weight [56, 240] (block structure, see kernel comment).
    wbig = jnp.zeros((D_IN, D_BIG), jnp.float32)
    # Fold LN affine into the first linear:  LN_aff(x) @ w1 = xn @ (g*w1) + b @ w1
    wbig = wbig.at[:N_SCALARS_IN, :HIDDEN].set(params["w1_inv"] * g_inv)
    wbig = wbig.at[:N_SCALARS_IN, HIDDEN:H_FUSED].set(params["w1_w"] * g_w)
    wbig = wbig.at[N_SCALARS_IN:, H_FUSED + N_SCALARS_OUT:].set(jnp.asarray(_R_EQ_NP))

    bbig = jnp.zeros((1, D_BIG), jnp.float32)
    bbig = bbig.at[0, :HIDDEN].set(
        (params["b_inv"].reshape(1, -1) @ params["w1_inv"])[0])
    bbig = bbig.at[0, HIDDEN:H_FUSED].set(
        (params["b_w"].reshape(1, -1) @ params["w1_w"])[0])
    bbig = bbig.at[0, H_FUSED:H_FUSED + N_SCALARS_OUT].set(1.0)   # gate ones

    # Block-diagonal second linear; the weights_emb half is pre-expanded by Q so
    # its output lands directly in the 96-wide (u,v,m) product layout.  EQ_NORM
    # is folded here (in f32) so the 0/1 matrices stay exact after the bf16 cast.
    w2 = jnp.zeros((H_FUSED, D_MIX), jnp.float32)
    w2 = w2.at[:HIDDEN, :N_SCALARS_OUT].set(params["w2_inv"])
    w2 = w2.at[HIDDEN:, N_SCALARS_OUT:].set((EQ_NORM * params["w2_w"]) @ jnp.asarray(_Q_NP))

    t = jnp.asarray(_T_NP)

    return (wbig.astype(jnp.bfloat16), bbig,
            w2.astype(jnp.bfloat16), t.astype(jnp.bfloat16))


def _choose_tile(n):
    n8 = _round_up(max(n, 8), 8)
    if n8 <= TM_SPLIT_THRESHOLD:
        return n8                                  # tiny input: single tile
    if n8 <= 2 * TM_MAX:
        # Guarantee >= 2 grid steps so ("parallel",) shards across both v7x
        # TensorCores; one extra pipeline step is negligible on v5e/v6e.
        return _round_up((n8 + 1) // 2, 8)
    return TM_MAX


def readout_forward(x, params):
    n = x.shape[0]
    assert x.shape[1] == D_IN

    tm = _choose_tile(n)
    wbig, bbig, w2, t = _fuse_params(params)

    def full(shape):
        return pl.BlockSpec(shape, lambda i: (0, 0))

    # No wrapper-side padding / slicing: grid = cdiv(n, tm); the ragged last
    # block's OOB reads are row-independent garbage and its OOB writes are
    # discarded by Pallas on store.
    out = pl.pallas_call(
        readout_kernel,
        out_shape=jax.ShapeDtypeStruct((n, D_OUT), jnp.float32),
        grid_spec=pltpu.PrefetchScalarGridSpec(
            num_scalar_prefetch=0,
            grid=(pl.cdiv(n, tm),),
            in_specs=[
                pl.BlockSpec((tm, D_IN), lambda i: (i, 0)),
                full((D_IN, D_BIG)),
                full((1, D_BIG)),
                full((H_FUSED, D_MIX)),
                full((D_MIX, D_OUT)),
            ],
            out_specs=pl.BlockSpec((tm, D_OUT), lambda i: (i, 0)),
        ),
        compiler_params=pltpu.CompilerParams(
            dimension_semantics=("parallel",),
            vmem_limit_bytes=32 * 1024 * 1024,
        ),
    )(x, wbig, bbig, w2, t)
    return out


# ---- pure-JAX reference (same math as the PyTorch module, unfused, f32) -----
def _layernorm(x, g, b):
    mu = jnp.mean(x, axis=-1, keepdims=True)
    xc = x - mu
    var = jnp.mean(xc * xc, axis=-1, keepdims=True)
    return xc * jax.lax.rsqrt(var + EPS) * g + b


def _silu(x):
    return x * jax.nn.sigmoid(x)


def readout_reference(x, params):
    scal = x[:, :N_SCALARS_IN]
    eq = x[:, N_SCALARS_IN:].reshape(-1, MUL_IN, L_DIM)

    h = _layernorm(scal, params["g_inv"], params["b_inv"])
    inv_out = _silu(h @ params["w1_inv"]) @ params["w2_inv"]

    hw = _layernorm(scal, params["g_w"], params["b_w"])
    w = (_silu(hw @ params["w1_w"]) @ params["w2_w"]).reshape(-1, MUL_IN, MUL_OUT)

    eq_out = EQ_NORM * jnp.einsum("num,nuv->nvm", eq, w)
    return jnp.concatenate([inv_out, eq_out.reshape(-1, MUL_OUT * L_DIM)], axis=-1)


if __name__ == "__main__":
    key = jax.random.PRNGKey(0)
    keys = jax.random.split(key, 9)
    N = 300   # deliberately not a multiple of 8/TM to exercise the ragged last block

    x = jax.random.normal(keys[0], (N, D_IN), dtype=jnp.float32)

    params = {
        # inv_readout (ScalarMLPFunction with use_layer_norm=True)
        "g_inv": 1.0 + 0.1 * jax.random.normal(keys[1], (1, N_SCALARS_IN), dtype=jnp.float32),
        "b_inv": 0.1 * jax.random.normal(keys[2], (1, N_SCALARS_IN), dtype=jnp.float32),
        "w1_inv": jax.random.normal(keys[3], (N_SCALARS_IN, HIDDEN), dtype=jnp.float32)
                  / math.sqrt(N_SCALARS_IN),
        "w2_inv": jax.random.normal(keys[4], (HIDDEN, N_SCALARS_OUT), dtype=jnp.float32)
                  / math.sqrt(HIDDEN),
        # weights_emb (produces eq_readout's per-node weights)
        "g_w": 1.0 + 0.1 * jax.random.normal(keys[5], (1, N_SCALARS_IN), dtype=jnp.float32),
        "b_w": 0.1 * jax.random.normal(keys[6], (1, N_SCALARS_IN), dtype=jnp.float32),
        "w1_w": jax.random.normal(keys[7], (N_SCALARS_IN, HIDDEN), dtype=jnp.float32)
                / math.sqrt(N_SCALARS_IN),
        "w2_w": jax.random.normal(keys[8], (HIDDEN, W_NUMEL), dtype=jnp.float32)
                / math.sqrt(HIDDEN),
    }

    out = readout_forward(x, params)
    out = jax.block_until_ready(out)

    ref = readout_reference(x, params)
    assert out.shape == (N, D_OUT) and out.dtype == jnp.float32
    # bf16 MXU operands (f32 accumulate) vs f32 reference -> relaxed tolerance.
    max_err = float(jnp.max(jnp.abs(out - ref)))
    assert jnp.allclose(out, ref, rtol=3e-2, atol=6e-2), max_err

    print("KERNEL_OK")
</pallas_src>

<mosaic_0001>
module attributes {stable_mosaic.version = 11 : i64} {
  func.func @readout_kernel(%arg0: i32, %arg1: memref<304x56xf32, #tpu.memory_space<vmem>>, %arg2: memref<56x240xbf16, #tpu.memory_space<vmem>>, %arg3: memref<1x240xf32, #tpu.memory_space<vmem>>, %arg4: memref<128x112xbf16, #tpu.memory_space<vmem>>, %arg5: memref<112x28xbf16, #tpu.memory_space<vmem>>, %arg6: memref<304x28xf32, #tpu.memory_space<vmem>>) attributes {dimension_semantics = [#tpu.dimension_semantics<parallel>], iteration_bounds = array<i64: 1>, scalar_prefetch = 0 : i64, scratch_operands = 0 : i64, tpu.core_type = #tpu.core_type<tc>, window_params = [{transform_indices = @transform_0, window_bounds = array<i64: 304, 56>}, {pipeline_mode = #tpu.pipeline_mode<synchronous>, transform_indices = @transform_1, window_bounds = array<i64: 56, 240>}, {pipeline_mode = #tpu.pipeline_mode<synchronous>, transform_indices = @transform_2, window_bounds = array<i64: 1, 240>}, {pipeline_mode = #tpu.pipeline_mode<synchronous>, transform_indices = @transform_3, window_bounds = array<i64: 128, 112>}, {pipeline_mode = #tpu.pipeline_mode<synchronous>, transform_indices = @transform_4, window_bounds = array<i64: 112, 28>}, {transform_indices = @transform_5, window_bounds = array<i64: 304, 28>}]} {
    %c0 = arith.constant 0 : index
    %c0_0 = arith.constant 0 : index
    %0 = vector.load %arg1[%c0, %c0_0] : memref<304x56xf32, #tpu.memory_space<vmem>>, vector<304x56xf32>
    %1 = vector.extract_strided_slice %0 {offsets = [0, 0], sizes = [304, 32], strides = [1, 1]} : vector<304x56xf32> to vector<304x32xf32>
    %cst = arith.constant dense<0.000000e+00> : vector<304xf32>
    %2 = vector.multi_reduction <add>, %1, %cst [1] : vector<304x32xf32> to vector<304xf32>
    %3 = vector.shape_cast %2 : vector<304xf32> to vector<304x1xf32>
    %cst_1 = arith.constant 3.200000e+01 : f32
    %4 = vector.broadcast %cst_1 : f32 to vector<304x1xf32>
    %5 = arith.divf %3, %4 : vector<304x1xf32>
    %6 = arith.mulf %1, %1 : vector<304x32xf32>
    %cst_2 = arith.constant dense<0.000000e+00> : vector<304xf32>
    %7 = vector.multi_reduction <add>, %6, %cst_2 [1] : vector<304x32xf32> to vector<304xf32>
    %8 = vector.shape_cast %7 : vector<304xf32> to vector<304x1xf32>
    %cst_3 = arith.constant 3.200000e+01 : f32
    %9 = vector.broadcast %cst_3 : f32 to vector<304x1xf32>
    %10 = arith.divf %8, %9 : vector<304x1xf32>
    %11 = arith.mulf %5, %5 : vector<304x1xf32>
    %12 = arith.subf %10, %11 : vector<304x1xf32>
    %cst_4 = arith.constant 0.000000e+00 : f32
    %13 = vector.broadcast %cst_4 : f32 to vector<304x1xf32>
    %14 = arith.maximumf %12, %13 : vector<304x1xf32>
    %cst_5 = arith.constant 9.99999974E-6 : f32
    %15 = vector.broadcast %cst_5 : f32 to vector<304x1xf32>
    %16 = arith.addf %14, %15 : vector<304x1xf32>
    %17 = math.rsqrt %16 : vector<304x1xf32>
    %18 = tpu.iota {dimensions = array<i32: 1>} : vector<1x56xi32>
    %c32_i32 = arith.constant 32 : i32
    %19 = vector.broadcast %c32_i32 : i32 to vector<1x56xi32>
    %20 = arith.cmpi slt, %18, %19 : vector<1x56xi32>
    %21 = vector.broadcast %5 : vector<304x1xf32> to vector<304x56xf32>
    %22 = arith.subf %0, %21 : vector<304x56xf32>
    %23 = vector.broadcast %17 : vector<304x1xf32> to vector<304x56xf32>
    %24 = arith.mulf %22, %23 : vector<304x56xf32>
    %25 = vector.shape_cast %20 : vector<1x56xi1> to vector<1x56xi1>
    %26 = vector.broadcast %25 : vector<1x56xi1> to vector<304x56xi1>
    %27 = arith.select %26, %24, %0 : vector<304x56xi1>, vector<304x56xf32>
    %28 = arith.truncf %27 : vector<304x56xf32> to vector<304x56xbf16>
    %c0_6 = arith.constant 0 : index
    %c0_7 = arith.constant 0 : index
    %29 = vector.load %arg2[%c0_6, %c0_7] : memref<56x240xbf16, #tpu.memory_space<vmem>>, vector<56x240xbf16>
    %cst_8 = arith.constant dense<0.000000e+00> : vector<304x240xf32>
    %30 = tpu.matmul %28, %29, %cst_8 {dimension_numbers = #tpu.dot_dimension_numbers<[1], [0], [0], [1], [0, 0, 1, 1], [], []>} : vector<304x56xbf16>, vector<56x240xbf16>, vector<304x240xf32> -> vector<304x240xf32>
    %c0_9 = arith.constant 0 : index
    %c0_10 = arith.constant 0 : index
    %31 = vector.load %arg3[%c0_9, %c0_10] : memref<1x240xf32, #tpu.memory_space<vmem>>, vector<1x240xf32>
    %32 = vector.broadcast %31 : vector<1x240xf32> to vector<304x240xf32>
    %33 = arith.addf %30, %32 : vector<304x240xf32>
    %34 = vector.extract_strided_slice %33 {offsets = [0, 0], sizes = [304, 128], strides = [1, 1]} : vector<304x240xf32> to vector<304x128xf32>
    %35 = arith.negf %34 : vector<304x128xf32>
    %36 = math.exp %35 : vector<304x128xf32>
    %cst_11 = arith.constant 1.000000e+00 : f32
    %37 = vector.broadcast %cst_11 : f32 to vector<304x128xf32>
    %38 = arith.addf %37, %36 : vector<304x128xf32>
    %39 = arith.divf %37, %38 : vector<304x128xf32>
    %40 = arith.mulf %34, %39 : vector<304x128xf32>
    %41 = vector.extract_strided_slice %33 {offsets = [0, 128], sizes = [304, 112], strides = [1, 1]} : vector<304x240xf32> to vector<304x112xf32>
    %42 = arith.truncf %40 : vector<304x128xf32> to vector<304x128xbf16>
    %c0_12 = arith.constant 0 : index
    %c0_13 = arith.constant 0 : index
    %43 = vector.load %arg4[%c0_12, %c0_13] : memref<128x112xbf16, #tpu.memory_space<vmem>>, vector<128x112xbf16>
    %cst_14 = arith.constant dense<0.000000e+00> : vector<304x112xf32>
    %44 = tpu.matmul %42, %43, %cst_14 {dimension_numbers = #tpu.dot_dimension_numbers<[1], [0], [0], [1], [0, 0, 1, 1], [], []>} : vector<304x128xbf16>, vector<128x112xbf16>, vector<304x112xf32> -> vector<304x112xf32>
    %45 = arith.mulf %44, %41 : vector<304x112xf32>
    %46 = arith.truncf %45 : vector<304x112xf32> to vector<304x112xbf16>
    %c0_15 = arith.constant 0 : index
    %c0_16 = arith.constant 0 : index
    %47 = vector.load %arg5[%c0_15, %c0_16] : memref<112x28xbf16, #tpu.memory_space<vmem>>, vector<112x28xbf16>
    %cst_17 = arith.constant dense<0.000000e+00> : vector<304x28xf32>
    %48 = tpu.matmul %46, %47, %cst_17 {dimension_numbers = #tpu.dot_dimension_numbers<[1], [0], [0], [1], [0, 0, 1, 1], [], []>} : vector<304x112xbf16>, vector<112x28xbf16>, vector<304x28xf32> -> vector<304x28xf32>
    %c0_18 = arith.constant 0 : index
    %c0_19 = arith.constant 0 : index
    %49 = vector.load %arg6[%c0_18, %c0_19] : memref<304x28xf32, #tpu.memory_space<vmem>>, vector<304x28xf32>
    tpu.vector_store %arg6[%c0_18, %c0_19], %48 {strides = array<i32>} : memref<304x28xf32, #tpu.memory_space<vmem>>, vector<304x28xf32>,
    return
  }
  func.func @transform_0(%arg0: i32) -> (i32, i32) {
    %c0_i32 = arith.constant 0 : i32
    %c0_i32_0 = arith.constant 0 : i32
    return %arg0, %c0_i32 : i32, i32
  }
  func.func @transform_1(%arg0: i32) -> (i32, i32) {
    %c0_i32 = arith.constant 0 : i32
    %c0_i32_0 = arith.constant 0 : i32
    %c0_i32_1 = arith.constant 0 : i32
    return %c0_i32, %c0_i32_0 : i32, i32
  }
  func.func @transform_2(%arg0: i32) -> (i32, i32) {
    %c0_i32 = arith.constant 0 : i32
    %c0_i32_0 = arith.constant 0 : i32
    %c0_i32_1 = arith.constant 0 : i32
    return %c0_i32, %c0_i32_0 : i32, i32
  }
  func.func @transform_3(%arg0: i32) -> (i32, i32) {
    %c0_i32 = arith.constant 0 : i32
    %c0_i32_0 = arith.constant 0 : i32
    %c0_i32_1 = arith.constant 0 : i32
    return %c0_i32, %c0_i32_0 : i32, i32
  }
  func.func @transform_4(%arg0: i32) -> (i32, i32) {
    %c0_i32 = arith.constant 0 : i32
    %c0_i32_0 = arith.constant 0 : i32
    %c0_i32_1 = arith.constant 0 : i32
    return %c0_i32, %c0_i32_0 : i32, i32
  }
  func.func @transform_5(%arg0: i32) -> (i32, i32) {
    %c0_i32 = arith.constant 0 : i32
    %c0_i32_0 = arith.constant 0 : i32
    return %arg0, %c0_i32 : i32, i32
  }
}

</mosaic_0001>

<bundles_post_ra>
// kernel: tpu_custom_call.1
= control target key start
LH: loop header
LB: loop body
LE: loop exit
PB: predicated region body
PF: predicated region fallthrough
CT: control target
= control target key end

     0   :  { %vm59_vm0 = vcmask 261120   ;;  %vm843_vm1 = vcmask 1043456   ;;  %v2623_v59 = vmov 0   ;;  %v593_v63 = vlaneseq  ;;  %s4033_s0 = inlined_call_operand.vmem [shape: f32[300,56], index: 0, kind: input, shape index: {}]   ;;  %s4034_s1 = inlined_call_operand.vmem [shape: bf16[56,240], index: 1, kind: input, shape index: {}]   ;;  %s4035_s2 = inlined_call_operand.vmem [shape: f32[1,240], index: 2, kind: input, shape index: {}]   ;;  %s4036_s3 = inlined_call_operand.vmem [shape: bf16[128,112], index: 3, kind: input, shape index: {}]   ;;  %s4037_s4 = inlined_call_operand.vmem [shape: bf16[112,28], index: 4, kind: input, shape index: {}]   ;;  %s4038_s5 = inlined_call_operand.vmem [shape: f32[300,28], index: 5, kind: output, shape index: {}]  }
   0x1   :  { %v2659_v0 = vld [vmem:[%s4033_s0] sm:$0xff]  ;;  %v2664_v1 = vld [vmem:[%s4033_s0 + $0x8] sm:$0xff]  ;;  %v2678_v7 = vld [vmem:[%s4033_s0 + $0x10] sm:$0xff]  ;;  %882 = vmatprep.mubr.bf16.mxu0 %v2623_v59  ;;  %982 = vmatprep.mubr.bf16.mxu1 %v2623_v59  ;;  %vm785_vm3 = vcmask 457728   ;;  %vm2625_vm4 = vmmov 0   ;;  %vm1720_vm5 = vcmask 916480  }
   0x2   :  { %v60_v2 = vsel %vm59_vm0, %v2659_v0, 0.0  ;;  %v213_v3 = vmul.f32 %v2659_v0, %v2659_v0  ;;  %v214_v4 = vmul.f32 %v2664_v1, %v2664_v1  ;;  %v63_v6 = vsel %vm59_vm0, %v2664_v1, 0.0  ;;  %v2684_v9 = vld [vmem:[%s4033_s0 + $0x18] sm:$0xff]  ;;  %v2698_v15 = vld [vmem:[%s4033_s0 + $0x20] sm:$0xff]  ;;  %v2704_v17 = vld [vmem:[%s4033_s0 + $0x28] sm:$0xff] }
   0x3   :  { %61 = vadd.xlane.f32.xlu0 %v60_v2  ;;  %v66_v10 = vsel %vm59_vm0, %v2678_v7, 0.0  ;;  %v215_v11 = vmul.f32 %v2678_v7, %v2678_v7  ;;  %v69_v12 = vsel %vm59_vm0, %v2684_v9, 0.0  ;;  %v216_v13 = vmul.f32 %v2684_v9, %v2684_v9  ;;  %v2718_v23 = vld [vmem:[%s4033_s0 + $0x30] sm:$0xff]  ;;  %v2724_v25 = vld [vmem:[%s4033_s0 + $0x38] sm:$0xff]  ;;  %v2738_v31 = vld [vmem:[%s4033_s0 + $0x40] sm:$0xff] }
   0x4   :  { %v251_v5 = vsel %vm59_vm0, %v213_v3, 0.0  ;;  %v254_v8 = vsel %vm59_vm0, %v214_v4, 0.0  ;;  %v72_v18 = vsel %vm59_vm0, %v2698_v15, 0.0  ;;  %v217_v19 = vmul.f32 %v2698_v15, %v2698_v15  ;;  %v737_v32 = vld [vmem:[%s4034_s1 + $0x30] sm:$0xff]  ;;  %v2747_v36 = vld [vmem:[%s4033_s0 + $0x48] sm:$0xff]  ;;  %v2779_v49 = vld [vmem:[%s4033_s0 + $0x58] sm:$0xff] }
   0x5   :  { %252 = vadd.xlane.f32.xlu1 %v251_v5  ;;  %v257_v14 = vsel %vm59_vm0, %v215_v11, 0.0  ;;  %v260_v16 = vsel %vm59_vm0, %v216_v13, 0.0  ;;  %v75_v20 = vsel %vm59_vm0, %v2704_v17, 0.0  ;;  %v218_v21 = vmul.f32 %v2704_v17, %v2704_v17  ;;  %v2354_v40 = vld [vmem:[%s4034_s1 + $0x24] ss:$8 sps:$4 sm:$0xff]   ;;  %v2767_v45 = vld [vmem:[%s4033_s0 + $0x50] sm:$0xff] }
   0x6   :  { %v263_v22 = vsel %vm59_vm0, %v217_v19, 0.0  ;;  %v78_v26 = vsel %vm59_vm0, %v2718_v23, 0.0  ;;  %v219_v27 = vmul.f32 %v2718_v23, %v2718_v23  ;;  %v81_v28 = vsel %vm59_vm0, %v2724_v25, 0.0  ;;  %v2356_v43 = vld [vmem:[%s4034_s1 + $0x20] ss:$8 sps:$4 sm:$0xff]  }
   0x7   :  { %64 = vadd.xlane.f32.xlu0 %v63_v6  ;;  %v266_v24 = vsel %vm59_vm0, %v218_v21, 0.0  ;;  %v220_v29 = vmul.f32 %v2724_v25, %v2724_v25  ;;  %v2013_v34 = vcombine.high %v737_v32, %v737_v32  ;;  %v2012_v35 = vcombine.low %v737_v32, %v737_v32  ;;  %v2357_v46 = vld [vmem:[%s4034_s1 + $0x14] ss:$8 sps:$4 sm:$0xff]   ;;  %v2359_v48 = vld [vmem:[%s4034_s1 + $0x10] ss:$8 sps:$4 sm:$0xff]   ;;  %v2799_v57 = vld [vmem:[%s4033_s0 + $0x60] sm:$0xff] }
   0x8   :  { %v269_v30 = vsel %vm59_vm0, %v219_v27, 0.0  ;;  %v84_v37 = vsel %vm59_vm0, %v2738_v31, 0.0  ;;  %v221_v38 = vmul.f32 %v2738_v31, %v2738_v31  ;;  %v87_v41 = vsel %vm59_vm0, %v2747_v36, 0.0  ;;  %v2360_v52 = vld [vmem:[%s4034_s1 + $0x4] ss:$8 sps:$4 sm:$0xff]   ;;  %v2824_v6 = vld [vmem:[%s4033_s0 + $0x70] sm:$0xff] }
   0x9   :  { %255 = vadd.xlane.f32.xlu1 %v254_v8  ;;  %v272_v33 = vsel %vm59_vm0, %v220_v29, 0.0  ;;  %2014 = vmatprep.subr.msk.bf16.mxu0 %vm843_vm1, %v2013_v34  ;;  %v845_v39 = vsel %vm843_vm1, %v2012_v35, 0  ;;  %v222_v42 = vmul.f32 %v2747_v36, %v2747_v36  ;;  %v90_v50 = vsel %vm59_vm0, %v2767_v45, 0.0  ;;  %v2362_v55 = vld [vmem:[%s4034_s1] ss:$8 sps:$4 sm:$0xff]   ;;  %v2870_v32 = vld [vmem:[%s4033_s0 + $0x90] sm:$0xff] }
   0xa   :  { %2341 = vmatprep.subr.msk.bf16.mxu1 %vm843_vm1, %v2013_v34  ;;  %859 = vmatpush1.bf16.msra.mxu0 %v845_v39  ;;  %v275_v44 = vsel %vm59_vm0, %v221_v38, 0.0  ;;  %v223_v51 = vmul.f32 %v2767_v45, %v2767_v45  ;;  %v93_v53 = vsel %vm59_vm0, %v2779_v49, 0.0  ;;  %v224_v54 = vmul.f32 %v2779_v49, %v2779_v49  ;;  %v2806_v60 = vld [vmem:[%s4033_s0 + $0x68] sm:$0xff]  ;;  %v738_v11 = vld [vmem:[%s4035_s2] sm:$0x3]  ;;  %v2876_v34 = vld [vmem:[%s4033_s0 + $0x98] sm:$0xff] }
   0xb   :  { %67 = vadd.xlane.f32.xlu0 %v66_v10  ;;  %2345 = vmatpush1.bf16.msra.mxu1 %v845_v39  ;;  %v278_v47 = vsel %vm59_vm0, %v222_v42, 0.0  ;;  %v96_v61 = vsel %vm59_vm0, %v2799_v57, 0.0  ;;  %v225_v62 = vmul.f32 %v2799_v57, %v2799_v57  ;;  %v99_v2 = vsel %vm59_vm0, %v2806_v60, 0.0  ;;  %v2850_v21 = vld [vmem:[%s4033_s0 + $0x80] sm:$0xff] }
   0xc   :  { %860 = vmatprep.subr.bf16.mxu0 %v2354_v40  ;;  %2342 = vmatprep.subr.bf16.mxu1 %v2354_v40  ;;  %v281_v56 = vsel %vm59_vm0, %v223_v51, 0.0  ;;  %v284_v58 = vsel %vm59_vm0, %v224_v54, 0.0  ;;  %v226_v3 = vmul.f32 %v2806_v60, %v2806_v60  ;;  %v2818_v4 = vshrl.u32 %v593_v63, 7  ;;  %v2910_v51 = vld [vmem:[%s4033_s0 + $0xb0] sm:$0xff] }
   0xd   :  { %70 = vadd.xlane.f32.xlu1 %v69_v12  ;;  %v287_v5 = vsel %vm59_vm0, %v225_v62, 0.0  ;;  %v2834_v12 = vld [vmem:[%s4033_s0 + $0x78] sm:$0xff]  ;;  %v229_v27 = vmul.f32 %v2850_v21, %v2850_v21  ;;  %v114_v35 = vsel %vm59_vm0, %v2870_v32, 0.0  ;;  %v117_v38 = vsel %vm59_vm0, %v2876_v34, 0.0  ;;  %v45_v62 = vld [vmem:[%s4033_s0 + $0xc0] sm:$0xff] }
   0xe   :  { %861 = vmatpush1.bf16.msra.mxu0 %v2356_v43  ;;  %v746_v8 = vsub.s32 1, %v2818_v4  ;;  %v290_v10 = vsel %vm59_vm0, %v226_v3, 0.0  ;;  %v228_v19 = vmul.f32 %v2834_v12, %v2834_v12  ;;  %v232_v39 = vmul.f32 %v2876_v34, %v2876_v34  ;;  %v46_v3 = vld [vmem:[%s4033_s0 + $0xc8] sm:$0xff] }
   0xf   :  { %258 = vadd.xlane.f32.xlu0 %v257_v14  ;;  %2346 = vmatpush1.bf16.msra.mxu1 %v2356_v43  ;;  %v102_v14 = vsel %vm59_vm0, %v2824_v6, 0.0  ;;  %v2896_v43 = vld [vmem:[%s4033_s0 + $0xa8] sm:$0xff]  ;;  %v126_v54 = vsel %vm59_vm0, %v2910_v51, 0.0  ;;  %vm1963_vm6 = vcmask 228352  }
  0x10   :  { %862 = vmatprep.subr.bf16.mxu0 %v2357_v46  ;;  %2343 = vmatprep.subr.bf16.mxu1 %v2357_v46  ;;  %v2836_v13 = vrot.slane %v738_v11, %v746_v8  ;;  %v308_v42 = vsel %vm59_vm0, %v232_v39, 0.0  ;;  %v237_v8 = vmul.f32 %v45_v62, %v45_v62  ;;  %v238_v11 = vmul.f32 %v46_v3, %v46_v3 }
  0x11   :  { %261 = vadd.xlane.f32.xlu1 %v260_v16  ;;  %v227_v16 = vmul.f32 %v2824_v6, %v2824_v6 }
  0x12   :  { %863 = vmatpush1.bf16.msra.mxu0 %v2359_v48 }
  0x13   :  { %73 = vadd.xlane.f32.xlu0 %v72_v18  ;;  %2347 = vmatpush1.bf16.msra.mxu1 %v2359_v48  ;;  %v105_v18 = vsel %vm59_vm0, %v2834_v12, 0.0  ;;  %v234_v48 = vmul.f32 %v2896_v43, %v2896_v43 }
  0x14   :  { %864 = vmatprep.subr.bf16.mxu0 %v2360_v52  ;;  %2344 = vmatprep.subr.bf16.mxu1 %v2360_v52 }
  0x15   :  { %76 = vadd.xlane.f32.xlu1 %v75_v20  ;;  %v293_v20 = vsel %vm59_vm0, %v227_v16, 0.0  ;;  %v314_v52 = vsel %vm59_vm0, %v234_v48, 0.0  ;;  %v47_v16 = vld [vmem:[%s4033_s0 + $0xd0] sm:$0xff] }
  0x16   :  { %865 = vmatpush1.bf16.msra.mxu0 %v2362_v55 }
  0x17   :  { %264 = vadd.xlane.f32.xlu0 %v263_v22  ;;  %2348 = vmatpush1.bf16.msra.mxu1 %v2362_v55  ;;  %v296_v22 = vsel %vm59_vm0, %v228_v19, 0.0  ;;  %v235_v55 = vmul.f32 %v2910_v51, %v2910_v51  ;;  %v48_v19 = vld [vmem:[%s4033_s0 + $0xd8] sm:$0xff] }
  0x19   :  { %267 = vadd.xlane.f32.xlu1 %v266_v24  ;;  %v2856_v24 = vld [vmem:[%s4033_s0 + $0x88] sm:$0xff] }
  0x1a   :  { %v230_v29 = vmul.f32 %v2856_v24, %v2856_v24 }
  0x1b   :  { %79 = vadd.xlane.f32.xlu0 %v78_v26  ;;  %v108_v26 = vsel %vm59_vm0, %v2850_v21, 0.0 }
  0x1d   :  { %82 = vadd.xlane.f32.xlu1 %v81_v28  ;;  %v111_v28 = vsel %vm59_vm0, %v2856_v24, 0.0 }
  0x1f   :  { %270 = vadd.xlane.f32.xlu0 %v269_v30  ;;  %v299_v30 = vsel %vm59_vm0, %v229_v27, 0.0  ;;  %v240_v27 = vmul.f32 %v48_v19, %v48_v19 }
  0x21   :  { %273 = vadd.xlane.f32.xlu1 %v272_v33  ;;  %v302_v33 = vsel %vm59_vm0, %v230_v29, 0.0  ;;  %v49_v29 = vld [vmem:[%s4033_s0 + $0xe0] sm:$0xff] }
  0x23   :  { %85 = vadd.xlane.f32.xlu0 %v84_v37  ;;  %v231_v37 = vmul.f32 %v2870_v32, %v2870_v32 }
  0x25   :  { %88 = vadd.xlane.f32.xlu1 %v87_v41  ;;  %v305_v40 = vsel %vm59_vm0, %v231_v37, 0.0  ;;  %v2890_v41 = vld [vmem:[%s4033_s0 + $0xa0] sm:$0xff]  ;;  %v241_v37 = vmul.f32 %v49_v29, %v49_v29 }
  0x26   :  { %v233_v46 = vmul.f32 %v2890_v41, %v2890_v41 }
  0x27   :  { %276 = vadd.xlane.f32.xlu0 %v275_v44  ;;  %v120_v44 = vsel %vm59_vm0, %v2890_v41, 0.0 }
  0x29   :  { %279 = vadd.xlane.f32.xlu1 %v278_v47  ;;  %v123_v47 = vsel %vm59_vm0, %v2896_v43, 0.0 }
  0x2b   :  { %91 = vadd.xlane.f32.xlu0 %v90_v50  ;;  %v311_v50 = vsel %vm59_vm0, %v233_v46, 0.0  ;;  %v52_v46 = vld [vmem:[%s4033_s0 + $0xf8] sm:$0xff] }
  0x2d   :  { %94 = vadd.xlane.f32.xlu1 %v93_v53  ;;  %v2916_v53 = vld [vmem:[%s4033_s0 + $0xb8] sm:$0xff] }
  0x2f   :  { %282 = vadd.xlane.f32.xlu0 %v281_v56  ;;  %v129_v56 = vsel %vm59_vm0, %v2916_v53, 0.0 }
  0x31   :  { %285 = vadd.xlane.f32.xlu1 %v284_v58  ;;  %v236_v58 = vmul.f32 %v2916_v53, %v2916_v53 }
  0x33   :  { %97 = vadd.xlane.f32.xlu0 %v96_v61  ;;  %v317_v61 = vsel %vm59_vm0, %v235_v55, 0.0  ;;  %v53_v55 = vld [vmem:[%s4033_s0 + $0x100] sm:$0xff] }
  0x35   :  { %100 = vadd.xlane.f32.xlu1 %v99_v2  ;;  %v320_v2 = vsel %vm59_vm0, %v236_v58, 0.0  ;;  %v54_v58 = vld [vmem:[%s4033_s0 + $0x108] sm:$0xff] }
  0x37   :  { %288 = vadd.xlane.f32.xlu0 %v287_v5  ;;  %v132_v5 = vsel %vm59_vm0, %v45_v62, 0.0  ;;  %v245_v62 = vmul.f32 %v53_v55, %v53_v55 }
  0x39   :  { %291 = vadd.xlane.f32.xlu1 %v290_v10  ;;  %v135_v10 = vsel %vm59_vm0, %v46_v3, 0.0  ;;  %v246_v3 = vmul.f32 %v54_v58, %v54_v58 }
  0x3b   :  { %103 = vadd.xlane.f32.xlu0 %v102_v14  ;;  %v323_v14 = vsel %vm59_vm0, %v237_v8, 0.0  ;;  %v55_v8 = vld [vmem:[%s4033_s0 + $0x110] sm:$0xff] }
  0x3d   :  { %106 = vadd.xlane.f32.xlu1 %v105_v18  ;;  %v326_v18 = vsel %vm59_vm0, %v238_v11, 0.0  ;;  %v56_v11 = vld [vmem:[%s4033_s0 + $0x118] sm:$0xff] }
  0x3f   :  { %294 = vadd.xlane.f32.xlu0 %v293_v20  ;;  %v138_v20 = vsel %vm59_vm0, %v47_v16, 0.0 }
  0x41   :  { %297 = vadd.xlane.f32.xlu1 %v296_v22  ;;  %v239_v22 = vmul.f32 %v47_v16, %v47_v16  ;;  %v247_v16 = vmul.f32 %v55_v8, %v55_v8 }
  0x43   :  { %109 = vadd.xlane.f32.xlu0 %v108_v26  ;;  %v141_v26 = vsel %vm59_vm0, %v48_v19, 0.0  ;;  %v248_v19 = vmul.f32 %v56_v11, %v56_v11 }
  0x45   :  { %112 = vadd.xlane.f32.xlu1 %v111_v28  ;;  %v329_v28 = vsel %vm59_vm0, %v239_v22, 0.0  ;;  %v353_v22 = vsel %vm59_vm0, %v247_v16, 0.0 }
  0x47   :  { %300 = vadd.xlane.f32.xlu0 %v299_v30  ;;  %v332_v30 = vsel %vm59_vm0, %v240_v27, 0.0  ;;  %v57_v27 = vld [vmem:[%s4033_s0 + $0x120] sm:$0xff] }
  0x49   :  { %303 = vadd.xlane.f32.xlu1 %v302_v33  ;;  %v50_v33 = vld [vmem:[%s4033_s0 + $0xe8] sm:$0xff] }
  0x4a   :  { %v242_v39 = vmul.f32 %v50_v33, %v50_v33 }
  0x4b   :  { %115 = vadd.xlane.f32.xlu0 %v114_v35  ;;  %v144_v35 = vsel %vm59_vm0, %v49_v29, 0.0  ;;  %v356_v29 = vsel %vm59_vm0, %v248_v19, 0.0 }
  0x4d   :  { %118 = vadd.xlane.f32.xlu1 %v117_v38  ;;  %v147_v38 = vsel %vm59_vm0, %v50_v33, 0.0 }
  0x4f   :  { %306 = vadd.xlane.f32.xlu0 %v305_v40  ;;  %v335_v40 = vsel %vm59_vm0, %v241_v37, 0.0 }
  0x51   :  { %309 = vadd.xlane.f32.xlu1 %v308_v42  ;;  %v51_v42 = vld [vmem:[%s4033_s0 + $0xf0] sm:$0xff] }
  0x52   :  { %v243_v48 = vmul.f32 %v51_v42, %v51_v42 }
  0x53   :  { %121 = vadd.xlane.f32.xlu0 %v120_v44  ;;  %v338_v44 = vsel %vm59_vm0, %v242_v39, 0.0  ;;  %v249_v39 = vmul.f32 %v57_v27, %v57_v27 }
  0x55   :  { %124 = vadd.xlane.f32.xlu1 %v123_v47  ;;  %v150_v47 = vsel %vm59_vm0, %v51_v42, 0.0 }
  0x57   :  { %312 = vadd.xlane.f32.xlu0 %v311_v50  ;;  %v153_v50 = vsel %vm59_vm0, %v52_v46, 0.0 }
  0x59   :  { %315 = vadd.xlane.f32.xlu1 %v314_v52  ;;  %v244_v52 = vmul.f32 %v52_v46, %v52_v46 }
  0x5b   :  { %127 = vadd.xlane.f32.xlu0 %v126_v54  ;;  %v341_v54 = vsel %vm59_vm0, %v243_v48, 0.0 }
  0x5d   :  { %130 = vadd.xlane.f32.xlu1 %v129_v56  ;;  %v344_v56 = vsel %vm59_vm0, %v244_v52, 0.0 }
  0x5f   :  { %318 = vadd.xlane.f32.xlu0 %v317_v61  ;;  %v156_v61 = vsel %vm59_vm0, %v53_v55, 0.0  ;;  %v359_v55 = vsel %vm59_vm0, %v249_v39, 0.0 }
  0x61   :  { %321 = vadd.xlane.f32.xlu1 %v320_v2  ;;  %v159_v2 = vsel %vm59_vm0, %v54_v58, 0.0 }
  0x63   :  { %133 = vadd.xlane.f32.xlu0 %v132_v5  ;;  %v347_v5 = vsel %vm59_vm0, %v245_v62, 0.0 }
  0x65   :  { %136 = vadd.xlane.f32.xlu1 %v135_v10  ;;  %v350_v10 = vsel %vm59_vm0, %v246_v3, 0.0 }
  0x67   :  { %324 = vadd.xlane.f32.xlu0 %v323_v14  ;;  %v162_v14 = vsel %vm59_vm0, %v55_v8, 0.0 }
  0x69   :  { %327 = vadd.xlane.f32.xlu1 %v326_v18  ;;  %v165_v18 = vsel %vm59_vm0, %v56_v11, 0.0 }
  0x6b   :  { %139 = vadd.xlane.f32.xlu0 %v138_v20 }
  0x6d   :  { %142 = vadd.xlane.f32.xlu1 %v141_v26 }
  0x6f   :  { %330 = vadd.xlane.f32.xlu0 %v329_v28 }
  0x71   :  { %333 = vadd.xlane.f32.xlu1 %v332_v30 }
  0x73   :  { %145 = vadd.xlane.f32.xlu0 %v144_v35  ;;  %v58_v35 = vld [vmem:[%s4033_s0 + $0x128] sm:$0xff] }
  0x74   :  { %v171_v46 = vsel %vm59_vm0, %v58_v35, 0.0 }
  0x75   :  { %148 = vadd.xlane.f32.xlu1 %v147_v38  ;;  %v168_v38 = vsel %vm59_vm0, %v57_v27, 0.0 }
  0x77   :  { %336 = vadd.xlane.f32.xlu0 %v335_v40 }
  0x79   :  { %339 = vadd.xlane.f32.xlu1 %v338_v44 }
  0x7b   :  { %151 = vadd.xlane.f32.xlu0 %v150_v47  ;;  %v250_v47 = vmul.f32 %v58_v35, %v58_v35 }
  0x7d   :  { %154 = vadd.xlane.f32.xlu1 %v153_v50 }
  0x7f   :  { %342 = vadd.xlane.f32.xlu0 %v341_v54 }
  0x81   :  { %345 = vadd.xlane.f32.xlu1 %v344_v56 }
  0x83   :  { %157 = vadd.xlane.f32.xlu0 %v156_v61 }
  0x85   :  { %160 = vadd.xlane.f32.xlu1 %v159_v2  ;;  %v362_v2 = vsel %vm59_vm0, %v250_v47, 0.0  ;;  %v3021_v47 = vand.u32 127, %v593_v63 }
  0x87   :  { %348 = vadd.xlane.f32.xlu0 %v347_v5  ;;  %vm595_vm2 = vcmp.lt.s32.totalorder %v3021_v47, 32 }
  0x89   :  { %351 = vadd.xlane.f32.xlu1 %v350_v10 }
  0x8b   :  { %163 = vadd.xlane.f32.xlu0 %v162_v14 }
  0x8c   :  { %v62_v20 = vpop.xlane.xlu0 %61 }
  0x8d   :  { %v2987_v26 = vmul.f32 0.03125, %v62_v20  ;;  %166 = vadd.xlane.f32.xlu1 %v165_v18 }
  0x8e   :  { %v253_v28 = vpop.xlane.xlu1 %252 }
  0x8f   :  { %v403_v30 = vmul.f32 %v2987_v26, %v2987_v26  ;;  %v365_v33 = vmul.f32 0.03125, %v253_v28  ;;  %354 = vadd.xlane.f32.xlu0 %v353_v22 }
  0x90   :  { %v65_v37 = vpop.xlane.xlu0 %64 }
  0x91   :  { %v441_v40 = vsub.f32 %v365_v33, %v403_v30  ;;  %v2999_v42 = vmul.f32 0.03125, %v65_v37  ;;  %357 = vadd.xlane.f32.xlu1 %v356_v29 }
  0x92   :  { %v256_v44 = vpop.xlane.xlu1 %255 }
  0x93   :  { %v479_v48 = vmax.f32 %v441_v40, 0.0  ;;  %v404_v50 = vmul.f32 %v2999_v42, %v2999_v42  ;;  %v366_v52 = vmul.f32 0.03125, %v256_v44  ;;  %169 = vadd.xlane.f32.xlu0 %v168_v38 }
  0x94   :  { %v68_v54 = vpop.xlane.xlu0 %67 }
  0x95   :  { %v517_v56 = vadd.f32 1e-05, %v479_v48  ;;  %v442_v58 = vsub.f32 %v366_v52, %v404_v50  ;;  %v3005_v61 = vmul.f32 0.03125, %v68_v54  ;;  %172 = vadd.xlane.f32.xlu1 %v171_v46 }
  0x96   :  { %v71_v62 = vpop.xlane.xlu1 %70 }
  0x97   :  { %2378 = vrsqrt.f32 %v517_v56  ;;  %v480_v3 = vmax.f32 %v442_v58, 0.0  ;;  %v405_v5 = vmul.f32 %v3005_v61, %v3005_v61  ;;  %360 = vadd.xlane.f32.xlu0 %v359_v55  ;;  %v3010_v8 = vmul.f32 0.03125, %v71_v62 }
  0x98   :  { %v259_v10 = vpop.xlane.xlu0 %258  ;;  %v596_v55 = vsub.f32 %v2659_v0, %v2987_v26 }
  0x99   :  { %v518_v11 = vadd.f32 1e-05, %v480_v3  ;;  %v367_v14 = vmul.f32 0.03125, %v259_v10  ;;  %363 = vadd.xlane.f32.xlu1 %v362_v2  ;;  %v406_v18 = vmul.f32 %v3010_v8, %v3010_v8 }
  0x9a   :  { %v262_v16 = vpop.xlane.xlu1 %261 }
  0x9b   :  { %2380 = vrsqrt.f32 %v518_v11  ;;  %v443_v19 = vsub.f32 %v367_v14, %v405_v5  ;;  %v368_v20 = vmul.f32 0.03125, %v262_v16  ;;  %v597_v5 = vsub.f32 %v2664_v1, %v2999_v42 }
  0x9c   :  { %v74_v22 = vpop.xlane.xlu0 %73 }
  0x9d   :  { %v481_v27 = vmax.f32 %v443_v19, 0.0  ;;  %v444_v28 = vsub.f32 %v368_v20, %v406_v18  ;;  %v3014_v29 = vmul.f32 0.03125, %v74_v22 }
  0x9e   :  { %v77_v30 = vpop.xlane.xlu1 %76 }
  0x9f   :  { %v519_v33 = vadd.f32 1e-05, %v481_v27  ;;  %v482_v35 = vmax.f32 %v444_v28, 0.0  ;;  %v407_v37 = vmul.f32 %v3014_v29, %v3014_v29  ;;  %v3018_v38 = vmul.f32 0.03125, %v77_v30 }
  0xa0   :  { %v265_v39 = vpop.xlane.xlu0 %264 }
  0xa1   :  { %2382 = vrsqrt.f32 %v519_v33  ;;  %v520_v40 = vadd.f32 1e-05, %v482_v35  ;;  %v369_v44 = vmul.f32 0.03125, %v265_v39  ;;  %v408_v48 = vmul.f32 %v3018_v38, %v3018_v38 }
  0xa2   :  { %v268_v46 = vpop.xlane.xlu1 %267 }
  0xa3   :  { %2384 = vrsqrt.f32 %v520_v40  ;;  %v445_v50 = vsub.f32 %v369_v44, %v407_v37  ;;  %v370_v52 = vmul.f32 0.03125, %v268_v46 }
  0xa4   :  { %v2379_v54 = vpop.eup %2378  ;;  %v80_v56 = vpop.xlane.xlu0 %79 }
  0xa5   :  { %v483_v58 = vmax.f32 %v445_v50, 0.0  ;;  %v446_v62 = vsub.f32 %v370_v52, %v408_v48  ;;  %v3027_v2 = vmul.f32 0.03125, %v80_v56  ;;  %v634_v63 = vmul.f32 %v2379_v54, %v596_v55 }
  0xa6   :  { %v83_v3 = vpop.xlane.xlu1 %82  ;;  %v598_v50 = vsub.f32 %v2678_v7, %v3005_v61 }
  0xa7   :  { %v521_v10 = vadd.f32 1e-05, %v483_v58  ;;  %v484_v11 = vmax.f32 %v446_v62, 0.0  ;;  %v409_v14 = vmul.f32 %v3027_v2, %v3027_v2  ;;  %v3034_v18 = vmul.f32 0.03125, %v83_v3 }
  0xa8   :  { %v2381_v16 = vpop.eup %2380  ;;  %v271_v26 = vpop.xlane.xlu0 %270  ;;  %v674_v42 = vsel %vm595_vm2, %v634_v63, %v2659_v0  ;;  %v599_v0 = vsub.f32 %v2684_v9, %v3010_v8 }
  0xa9   :  { %2386 = vrsqrt.f32 %v521_v10  ;;  %v522_v19 = vadd.f32 1e-05, %v484_v11  ;;  %v371_v20 = vmul.f32 0.03125, %v271_v26  ;;  %v635_v22 = vmul.f32 %v2381_v16, %v597_v5 }
  0xaa   :  { %v410_v27 = vmul.f32 %v3034_v18, %v3034_v18  ;;  %v274_v28 = vpop.xlane.xlu1 %273 }
  0xab   :  { %2388 = vrsqrt.f32 %v522_v19  ;;  %v447_v30 = vsub.f32 %v371_v20, %v409_v14  ;;  %v372_v33 = vmul.f32 0.03125, %v274_v28  ;;  %v675_v35 = vsel %vm595_vm2, %v635_v22, %v2664_v1 }
  0xac   :  { %v86_v37 = vpop.xlane.xlu0 %85  ;;  %v712_v39 = vpack.c.bf16 %v675_v35, %v674_v42 }
  0xad   :  { %v485_v40 = vmax.f32 %v447_v30, 0.0  ;;  %v448_v44 = vsub.f32 %v372_v33, %v410_v27  ;;  %v3044_v46 = vmul.f32 0.03125, %v86_v37  ;;  %v600_v30 = vsub.f32 %v2698_v15, %v3014_v29 }
  0xae   :  { %v2383_v48 = vpop.eup %2382  ;;  %v89_v52 = vpop.xlane.xlu1 %88  ;;  %2015 = vmatmul.mubr.msk.bf16.vlgmr.msra.gmra.mxu0 %vm785_vm3, %v712_v39 }
  0xaf   :  { %v523_v54 = vadd.f32 1e-05, %v485_v40  ;;  %v486_v55 = vmax.f32 %v448_v44, 0.0  ;;  %v411_v1 = vmul.f32 %v3044_v46, %v3044_v46  ;;  %892 = vmatprep.mubr.bf16.mxu0 %v2623_v59  ;;  %v3054_v58 = vmul.f32 0.03125, %v89_v52 }
  0xb0   :  { %v2385_v56 = vpop.eup %2384  ;;  %v277_v62 = vpop.xlane.xlu0 %276  ;;  %v636_v3 = vmul.f32 %v2383_v48, %v598_v50 }
  0xb1   :  { %2390 = vrsqrt.f32 %v523_v54  ;;  %v524_v61 = vadd.f32 1e-05, %v486_v55  ;;  %v373_v63 = vmul.f32 0.03125, %v277_v62  ;;  %v637_v5 = vmul.f32 %v2385_v56, %v599_v0 }
  0xb2   :  { %v412_v10 = vmul.f32 %v3054_v58, %v3054_v58  ;;  %v280_v8 = vpop.xlane.xlu1 %279  ;;  %v676_v11 = vsel %vm595_vm2, %v636_v3, %v2678_v7  ;;  %v601_v7 = vsub.f32 %v2704_v17, %v3018_v38 }
  0xb3   :  { %2392 = vrsqrt.f32 %v524_v61  ;;  %v449_v14 = vsub.f32 %v373_v63, %v411_v1  ;;  %v374_v16 = vmul.f32 0.03125, %v280_v8  ;;  %v677_v26 = vsel %vm595_vm2, %v637_v5, %v2684_v9 }
  0xb4   :  { %v92_v19 = vpop.xlane.xlu0 %91  ;;  %v713_v20 = vpack.c.bf16 %v677_v26, %v676_v11  ;;  %v602_v8 = vsub.f32 %v2718_v23, %v3027_v2  ;;  %v2624_v26 = vmov 0.0  }
  0xb5   :  { %v487_v22 = vmax.f32 %v449_v14, 0.0  ;;  %v450_v27 = vsub.f32 %v374_v16, %v412_v10  ;;  %v3064_v28 = vmul.f32 0.03125, %v92_v19  ;;  %2159 = vmatprep.subr.bf16.mxu1 %v2624_v26  ;;  %2251 = vmatprep.subr.bf16.mxu0 %v2624_v26 }
  0xb6   :  { %v2387_v42 = vpop.eup %2386  ;;  %v95_v33 = vpop.xlane.xlu1 %94  ;;  %2016 = vmatmul.mubr.msk.bf16.gmra.mxu0 %vm785_vm3, %v713_v20 }
  0xb7   :  { %v525_v35 = vadd.f32 1e-05, %v487_v22  ;;  %v488_v37 = vmax.f32 %v450_v27, 0.0  ;;  %v413_v9 = vmul.f32 %v3064_v28, %v3064_v28  ;;  %902 = vmatprep.mubr.bf16.mxu0 %v2623_v59  ;;  %v3074_v40 = vmul.f32 0.03125, %v95_v33 }
  0xb8   :  { %v2389_v39 = vpop.eup %2388  ;;  %v283_v44 = vpop.xlane.xlu0 %282  ;;  %v638_v48 = vmul.f32 %v2387_v42, %v600_v30 }
  0xb9   :  { %2394 = vrsqrt.f32 %v525_v35  ;;  %v526_v29 = vadd.f32 1e-05, %v488_v37  ;;  %v375_v50 = vmul.f32 0.03125, %v283_v44  ;;  %v639_v52 = vmul.f32 %v2389_v39, %v601_v7 }
  0xba   :  { %v414_v0 = vmul.f32 %v3074_v40, %v3074_v40  ;;  %v286_v38 = vpop.xlane.xlu1 %285  ;;  %v678_v54 = vsel %vm595_vm2, %v638_v48, %v2698_v15  ;;  %v603_v15 = vsub.f32 %v2724_v25, %v3034_v18 }
  0xbb   :  { %2396 = vrsqrt.f32 %v526_v29  ;;  %v451_v55 = vsub.f32 %v375_v50, %v413_v9  ;;  %v376_v1 = vmul.f32 0.03125, %v286_v38  ;;  %v679_v56 = vsel %vm595_vm2, %v639_v52, %v2704_v17 }
  0xbc   :  { %v98_v62 = vpop.xlane.xlu0 %97  ;;  %v714_v3 = vpack.c.bf16 %v679_v56, %v678_v54 }
  0xbd   :  { %v489_v61 = vmax.f32 %v451_v55, 0.0  ;;  %v452_v63 = vsub.f32 %v376_v1, %v414_v0  ;;  %v3084_v5 = vmul.f32 0.03125, %v98_v62  ;;  %v604_v0 = vsub.f32 %v2738_v31, %v3044_v46 }
  0xbe   :  { %v2391_v10 = vpop.eup %2390  ;;  %v101_v11 = vpop.xlane.xlu1 %100  ;;  %2017 = vmatmul.mubr.msk.bf16.gmra.mxu0 %vm785_vm3, %v714_v3 }
  0xbf   :  { %v527_v14 = vadd.f32 1e-05, %v489_v61  ;;  %v490_v16 = vmax.f32 %v452_v63, 0.0  ;;  %v415_v17 = vmul.f32 %v3084_v5, %v3084_v5  ;;  %912 = vmatprep.mubr.bf16.mxu0 %v2623_v59  ;;  %v3095_v20 = vmul.f32 0.03125, %v101_v11 }
  0xc0   :  { %v2393_v19 = vpop.eup %2392  ;;  %v289_v2 = vpop.xlane.xlu0 %288  ;;  %v640_v22 = vmul.f32 %v2391_v10, %v602_v8 }
  0xc1   :  { %2398 = vrsqrt.f32 %v527_v14  ;;  %v528_v27 = vadd.f32 1e-05, %v490_v16  ;;  %v377_v18 = vmul.f32 0.03125, %v289_v2  ;;  %v641_v42 = vmul.f32 %v2393_v19, %v603_v15 }
  0xc2   :  { %v416_v30 = vmul.f32 %v3095_v20, %v3095_v20  ;;  %v292_v33 = vpop.xlane.xlu1 %291  ;;  %v680_v7 = vsel %vm595_vm2, %v640_v22, %v2718_v23  ;;  %v605_v23 = vsub.f32 %v2747_v36, %v3054_v58 }
  0xc3   :  { %2400 = vrsqrt.f32 %v528_v27  ;;  %v453_v35 = vsub.f32 %v377_v18, %v415_v17  ;;  %v378_v37 = vmul.f32 0.03125, %v292_v33  ;;  %v681_v9 = vsel %vm595_vm2, %v641_v42, %v2724_v25 }
  0xc4   :  { %v104_v39 = vpop.xlane.xlu0 %103  ;;  %v715_v44 = vpack.c.bf16 %v681_v9, %v680_v7  ;;  %v606_v18 = vsub.f32 %v2767_v45, %v3064_v28 }
  0xc5   :  { %v491_v48 = vmax.f32 %v453_v35, 0.0  ;;  %v454_v29 = vsub.f32 %v378_v37, %v416_v30  ;;  %v3106_v50 = vmul.f32 0.03125, %v104_v39 }
  0xc6   :  { %v2395_v52 = vpop.eup %2394  ;;  %v107_v38 = vpop.xlane.xlu1 %106  ;;  %2018 = vmatmul.mubr.msk.bf16.gmra.mxu0 %vm785_vm3, %v715_v44 }
  0xc7   :  { %v529_v54 = vadd.f32 1e-05, %v491_v48  ;;  %v492_v55 = vmax.f32 %v454_v29, 0.0  ;;  %v417_v25 = vmul.f32 %v3106_v50, %v3106_v50  ;;  %922 = vmatprep.mubr.bf16.mxu0 %v2623_v59  ;;  %v3116_v56 = vmul.f32 0.03125, %v107_v38 }
  0xc8   :  { %v2397_v1 = vpop.eup %2396  ;;  %v295_v62 = vpop.xlane.xlu0 %294  ;;  %v642_v3 = vmul.f32 %v2395_v52, %v604_v0 }
  0xc9   :  { %2402 = vrsqrt.f32 %v529_v54  ;;  %v530_v46 = vadd.f32 1e-05, %v492_v55  ;;  %v379_v61 = vmul.f32 0.03125, %v295_v62  ;;  %v643_v63 = vmul.f32 %v2397_v1, %v605_v23 }
  0xca   :  { %v418_v10 = vmul.f32 %v3116_v56, %v3116_v56  ;;  %v298_v58 = vpop.xlane.xlu1 %297  ;;  %v682_v8 = vsel %vm595_vm2, %v642_v3, %v2738_v31  ;;  %v607_v31 = vsub.f32 %v2779_v49, %v3074_v40  ;;  %v608_v3 = vsub.f32 %v2799_v57, %v3084_v5 }
  0xcb   :  { %2404 = vrsqrt.f32 %v530_v46  ;;  %v455_v11 = vsub.f32 %v379_v61, %v417_v25  ;;  %v380_v15 = vmul.f32 0.03125, %v298_v58  ;;  %v683_v14 = vsel %vm595_vm2, %v643_v63, %v2747_v36 }
  0xcc   :  { %v110_v16 = vpop.xlane.xlu0 %109  ;;  %v716_v17 = vpack.c.bf16 %v683_v14, %v682_v8 }
  0xcd   :  { %v493_v19 = vmax.f32 %v455_v11, 0.0  ;;  %v456_v2 = vsub.f32 %v380_v15, %v418_v10  ;;  %v3126_v22 = vmul.f32 0.03125, %v110_v16 }
  0xce   :  { %v2399_v27 = vpop.eup %2398  ;;  %v113_v42 = vpop.xlane.xlu1 %112  ;;  %2019 = vmatmul.mubr.msk.bf16.gmra.mxu0 %vm785_vm3, %v716_v17 }
  0xcf   :  { %v531_v30 = vadd.f32 1e-05, %v493_v19  ;;  %v494_v33 = vmax.f32 %v456_v2, 0.0  ;;  %v419_v36 = vmul.f32 %v3126_v22, %v3126_v22  ;;  %932 = vmatprep.mubr.bf16.mxu0 %v2623_v59  ;;  %v3136_v35 = vmul.f32 0.03125, %v113_v42 }
  0xd0   :  { %v2401_v7 = vpop.eup %2400  ;;  %v301_v37 = vpop.xlane.xlu0 %300  ;;  %v644_v9 = vmul.f32 %v2399_v27, %v606_v18 }
  0xd1   :  { %2406 = vrsqrt.f32 %v531_v30  ;;  %v532_v28 = vadd.f32 1e-05, %v494_v33  ;;  %v381_v39 = vmul.f32 0.03125, %v301_v37  ;;  %v645_v44 = vmul.f32 %v2401_v7, %v607_v31 }
  0xd2   :  { %v420_v48 = vmul.f32 %v3136_v35, %v3136_v35  ;;  %v304_v40 = vpop.xlane.xlu1 %303  ;;  %v684_v29 = vsel %vm595_vm2, %v644_v9, %v2767_v45  ;;  %v609_v45 = vsub.f32 %v2806_v60, %v3095_v20  ;;  %v610_v7 = vsub.f32 %v2824_v6, %v3106_v50 }
  0xd3   :  { %2408 = vrsqrt.f32 %v532_v28  ;;  %v457_v52 = vsub.f32 %v381_v39, %v419_v36  ;;  %v382_v0 = vmul.f32 0.03125, %v304_v40  ;;  %v685_v38 = vsel %vm595_vm2, %v645_v44, %v2779_v49 }
  0xd4   :  { %v116_v23 = vpop.xlane.xlu0 %115  ;;  %v717_v54 = vpack.c.bf16 %v685_v38, %v684_v29 }
  0xd5   :  { %v495_v55 = vmax.f32 %v457_v52, 0.0  ;;  %v458_v25 = vsub.f32 %v382_v0, %v420_v48  ;;  %v3146_v1 = vmul.f32 0.03125, %v116_v23 }
  0xd6   :  { %v2403_v62 = vpop.eup %2402  ;;  %v119_v46 = vpop.xlane.xlu1 %118  ;;  %2020 = vmatmul.mubr.msk.bf16.gmra.mxu0 %vm785_vm3, %v717_v54 }
  0xd7   :  { %v533_v61 = vadd.f32 1e-05, %v495_v55  ;;  %v496_v63 = vmax.f32 %v458_v25, 0.0  ;;  %v421_v49 = vmul.f32 %v3146_v1, %v3146_v1  ;;  %942 = vmatprep.mubr.bf16.mxu0 %v2623_v59  ;;  %v3156_v58 = vmul.f32 0.03125, %v119_v46 }
  0xd8   :  { %v2405_v10 = vpop.eup %2404  ;;  %v307_v8 = vpop.xlane.xlu0 %306  ;;  %v646_v11 = vmul.f32 %v2403_v62, %v608_v3 }
  0xd9   :  { %2410 = vrsqrt.f32 %v533_v61  ;;  %v534_v5 = vadd.f32 1e-05, %v496_v63  ;;  %v383_v15 = vmul.f32 0.03125, %v307_v8  ;;  %v647_v14 = vmul.f32 %v2405_v10, %v609_v45 }
  0xda   :  { %v422_v16 = vmul.f32 %v3156_v58, %v3156_v58  ;;  %v310_v20 = vpop.xlane.xlu1 %309  ;;  %v686_v17 = vsel %vm595_vm2, %v646_v11, %v2799_v57  ;;  %v611_v57 = vsub.f32 %v2834_v12, %v3116_v56  ;;  %v612_v63 = vsub.f32 %v2850_v21, %v3126_v22 }
  0xdb   :  { %2412 = vrsqrt.f32 %v534_v5  ;;  %v459_v19 = vsub.f32 %v383_v15, %v421_v49  ;;  %v384_v2 = vmul.f32 0.03125, %v310_v20  ;;  %v687_v27 = vsel %vm595_vm2, %v647_v14, %v2806_v60 }
  0xdc   :  { %v122_v18 = vpop.xlane.xlu0 %121  ;;  %v718_v42 = vpack.c.bf16 %v687_v27, %v686_v17 }
  0xdd   :  { %v497_v31 = vmax.f32 %v459_v19, 0.0  ;;  %v460_v30 = vsub.f32 %v384_v2, %v422_v16  ;;  %v3166_v33 = vmul.f32 0.03125, %v122_v18 }
  0xde   :  { %v2407_v36 = vpop.eup %2406  ;;  %v125_v37 = vpop.xlane.xlu1 %124  ;;  %2021 = vmatmul.mubr.msk.bf16.gmra.mxu0 %vm785_vm3, %v718_v42 }
  0xdf   :  { %v535_v9 = vadd.f32 1e-05, %v497_v31  ;;  %v498_v28 = vmax.f32 %v460_v30, 0.0  ;;  %v423_v60 = vmul.f32 %v3166_v33, %v3166_v33  ;;  %952 = vmatprep.mubr.bf16.mxu0 %v2623_v59  ;;  %v3176_v44 = vmul.f32 0.03125, %v125_v37 }
  0xe0   :  { %v2409_v39 = vpop.eup %2408  ;;  %v313_v48 = vpop.xlane.xlu0 %312  ;;  %v648_v40 = vmul.f32 %v2407_v36, %v610_v7 }
  0xe1   :  { %2414 = vrsqrt.f32 %v535_v9  ;;  %v536_v50 = vadd.f32 1e-05, %v498_v28  ;;  %v385_v29 = vmul.f32 0.03125, %v313_v48  ;;  %v649_v52 = vmul.f32 %v2409_v39, %v611_v57 }
  0xe2   :  { %v424_v0 = vmul.f32 %v3176_v44, %v3176_v44  ;;  %v316_v56 = vpop.xlane.xlu1 %315  ;;  %v688_v38 = vsel %vm595_vm2, %v648_v40, %v2824_v6  ;;  %v613_v6 = vsub.f32 %v2856_v24, %v3136_v35  ;;  %v614_v57 = vsub.f32 %v2870_v32, %v3146_v1 }
  0xe3   :  { %2416 = vrsqrt.f32 %v536_v50  ;;  %v461_v23 = vsub.f32 %v385_v29, %v423_v60  ;;  %v386_v54 = vmul.f32 0.03125, %v316_v56  ;;  %v689_v55 = vsel %vm595_vm2, %v649_v52, %v2834_v12 }
  0xe4   :  { %v128_v25 = vpop.xlane.xlu0 %127  ;;  %v719_v62 = vpack.c.bf16 %v689_v55, %v688_v38 }
  0xe5   :  { %v499_v3 = vmax.f32 %v461_v23, 0.0  ;;  %v462_v46 = vsub.f32 %v386_v54, %v424_v0  ;;  %v3186_v45 = vmul.f32 0.03125, %v128_v25 }
  0xe6   :  { %v2411_v61 = vpop.eup %2410  ;;  %v131_v49 = vpop.xlane.xlu1 %130  ;;  %2022 = vmatmul.mubr.msk.bf16.gmra.mxu0 %vm785_vm3, %v719_v62 }
  0xe7   :  { %v537_v10 = vadd.f32 1e-05, %v499_v3  ;;  %v500_v8 = vmax.f32 %v462_v46, 0.0  ;;  %v425_v12 = vmul.f32 %v3186_v45, %v3186_v45  ;;  %962 = vmatprep.mubr.bf16.mxu0 %v2623_v59  ;;  %v3196_v5 = vmul.f32 0.03125, %v131_v49 }
  0xe8   :  { %v2413_v11 = vpop.eup %2412  ;;  %v319_v15 = vpop.xlane.xlu0 %318  ;;  %v650_v14 = vmul.f32 %v2411_v61, %v612_v63  ;;  %v616_v63 = vsub.f32 %v2890_v41, %v3166_v33 }
  0xe9   :  { %2418 = vrsqrt.f32 %v537_v10  ;;  %v538_v22 = vadd.f32 1e-05, %v500_v8  ;;  %v387_v16 = vmul.f32 0.03125, %v319_v15  ;;  %v651_v20 = vmul.f32 %v2413_v11, %v613_v6 }
  0xea   :  { %v426_v17 = vmul.f32 %v3196_v5, %v3196_v5  ;;  %v322_v35 = vpop.xlane.xlu1 %321  ;;  %v690_v19 = vsel %vm595_vm2, %v650_v14, %v2850_v21  ;;  %v615_v21 = vsub.f32 %v2876_v34, %v3156_v58 }
  0xeb   :  { %2420 = vrsqrt.f32 %v538_v22  ;;  %v463_v2 = vsub.f32 %v387_v16, %v425_v12  ;;  %v388_v27 = vmul.f32 0.03125, %v322_v35  ;;  %v691_v18 = vsel %vm595_vm2, %v651_v20, %v2856_v24 }
  0xec   :  { %v134_v42 = vpop.xlane.xlu0 %133  ;;  %v720_v31 = vpack.c.bf16 %v691_v18, %v690_v19 }
  0xed   :  { %v501_v30 = vmax.f32 %v463_v2, 0.0  ;;  %v464_v36 = vsub.f32 %v388_v27, %v426_v17  ;;  %v3206_v7 = vmul.f32 0.03125, %v134_v42  ;;  %v2363_v2 = vld [vmem:[%s4036_s3 + $0x38] sm:$0xff]  }
  0xee   :  { %v2415_v37 = vpop.eup %2414  ;;  %v137_v9 = vpop.xlane.xlu1 %136  ;;  %2023 = vmatmul.mubr.msk.bf16.gmra.mxu0 %vm785_vm3, %v720_v31 }
  0xef   :  { %v539_v28 = vadd.f32 1e-05, %v501_v30  ;;  %v502_v60 = vmax.f32 %v464_v36, 0.0  ;;  %v427_v24 = vmul.f32 %v3206_v7, %v3206_v7  ;;  %972 = vmatprep.mubr.bf16.mxu0 %v2623_v59  ;;  %v3216_v48 = vmul.f32 0.03125, %v137_v9 }
  0xf0   :  { %v2417_v39 = vpop.eup %2416  ;;  %v325_v40 = vpop.xlane.xlu0 %324  ;;  %v652_v50 = vmul.f32 %v2415_v37, %v614_v57 }
  0xf1   :  { %2422 = vrsqrt.f32 %v539_v28  ;;  %v540_v1 = vadd.f32 1e-05, %v502_v60  ;;  %v389_v29 = vmul.f32 0.03125, %v325_v40  ;;  %v653_v52 = vmul.f32 %v2417_v39, %v615_v21  ;;  %v2364_v28 = vld [vmem:[%s4036_s3 + $0x30] sm:$0xff]  }
  0xf2   :  { %v428_v0 = vmul.f32 %v3216_v48, %v3216_v48  ;;  %v328_v58 = vpop.xlane.xlu1 %327  ;;  %v692_v56 = vsel %vm595_vm2, %v652_v50, %v2870_v32  ;;  %v617_v32 = vsub.f32 %v2896_v43, %v3176_v44 }
  0xf3   :  { %2424 = vrsqrt.f32 %v540_v1  ;;  %v465_v38 = vsub.f32 %v389_v29, %v427_v24  ;;  %v390_v23 = vmul.f32 0.03125, %v328_v58  ;;  %v693_v54 = vsel %vm595_vm2, %v653_v52, %v2876_v34  ;;  %v2606_v1 = vld [vmem:[%s4033_s0 + $0xb0] sm:$0xff]  ;;  %v2607_v58 = vld [vmem:[%s4033_s0 + $0xb8] sm:$0xff] }
  0xf4   :  { %v140_v55 = vpop.xlane.xlu0 %139  ;;  %v721_v25 = vpack.c.bf16 %v693_v54, %v692_v56 }
  0xf5   :  { %v503_v62 = vmax.f32 %v465_v38, 0.0  ;;  %v466_v3 = vsub.f32 %v390_v23, %v428_v0  ;;  %v3226_v46 = vmul.f32 0.03125, %v140_v55  ;;  %v2365_v38 = vld [vmem:[%s4036_s3 + $0x28] sm:$0xff]  }
  0xf6   :  { %v2419_v61 = vpop.eup %2418  ;;  %v143_v49 = vpop.xlane.xlu1 %142  ;;  %2024 = vmatmul.mubr.msk.bf16.gmra.mxu0 %vm785_vm3, %v721_v25 }
  0xf7   :  { %v541_v6 = vadd.f32 1e-05, %v503_v62  ;;  %v504_v10 = vmax.f32 %v466_v3, 0.0  ;;  %v429_v34 = vmul.f32 %v3226_v46, %v3226_v46  ;;  %v3235_v12 = vmul.f32 0.03125, %v143_v49  ;;  %2265 = vmatprep.mubr.msk.bf16.mxu0 %vm2625_vm4, %v2624_v26 }
  0xf8   :  { %v2421_v8 = vpop.eup %2420  ;;  %v331_v11 = vpop.xlane.xlu0 %330  ;;  %v654_v15 = vmul.f32 %v2419_v61, %v616_v63  ;;  %v2608_v61 = vld [vmem:[%s4033_s0 + $0xc0] sm:$0xff] }
  0xf9   :  { %2426 = vrsqrt.f32 %v541_v6  ;;  %v542_v14 = vadd.f32 1e-05, %v504_v10  ;;  %v391_v22 = vmul.f32 0.03125, %v331_v11  ;;  %v655_v33 = vmul.f32 %v2421_v8, %v617_v32  ;;  %v2609_v32 = vld [vmem:[%s4033_s0 + $0xc8] sm:$0xff] }
  0xfa   :  { %v430_v16 = vmul.f32 %v3235_v12, %v3235_v12  ;;  %v334_v20 = vpop.xlane.xlu1 %333  ;;  %v694_v44 = vsel %vm595_vm2, %v654_v15, %v2890_v41  ;;  %v618_v41 = vsub.f32 %v2910_v51, %v3186_v45  ;;  %v620_v63 = vsub.f32 %v2608_v61, %v3206_v7  ;;  %v2366_v7 = vld [vmem:[%s4036_s3 + $0x20] sm:$0xff]  }
  0xfb   :  { %2428 = vrsqrt.f32 %v542_v14  ;;  %v467_v17 = vsub.f32 %v391_v22, %v429_v34  ;;  %v392_v35 = vmul.f32 0.03125, %v334_v20  ;;  %v695_v19 = vsel %vm595_vm2, %v655_v33, %v2896_v43 }
  0xfc   :  { %v146_v27 = vpop.xlane.xlu0 %145  ;;  %v722_v18 = vpack.c.bf16 %v695_v19, %v694_v44  ;;  %v619_v43 = vsub.f32 %v2916_v53, %v3196_v5  ;;  %v621_v6 = vsub.f32 %v2609_v32, %v3216_v48 }
  0xfd   :  { %v505_v42 = vmax.f32 %v467_v17, 0.0  ;;  %v468_v31 = vsub.f32 %v392_v35, %v430_v16  ;;  %v3248_v30 = vmul.f32 0.03125, %v146_v27  ;;  %v2367_v27 = vld [vmem:[%s4036_s3 + $0x18] sm:$0xff]  }
  0xfe   :  { %v2423_v36 = vpop.eup %2422  ;;  %v149_v37 = vpop.xlane.xlu1 %148  ;;  %2025 = vmatmul.mubr.msk.bf16.vlgmr.msra.gmra.mxu1 %vm785_vm3, %v722_v18 }
  0xff   :  { %v543_v57 = vadd.f32 1e-05, %v505_v42  ;;  %v506_v9 = vmax.f32 %v468_v31, 0.0  ;;  %v431_v21 = vmul.f32 %v3248_v30, %v3248_v30  ;;  %992 = vmatprep.mubr.bf16.mxu1 %v2623_v59  ;;  %2160 = vmatpush3.bf16.msra.mxu1 %v2363_v2  ;;  %v3261_v51 = vmul.f32 0.03125, %v149_v37 }
 0x100   :  { %v2425_v60 = vpop.eup %2424  ;;  %v337_v45 = vpop.xlane.xlu0 %336  ;;  %v656_v24 = vmul.f32 %v2423_v36, %v618_v41  ;;  %2161 = vmatprep.subr.bf16.mxu1 %v2624_v26 }
 0x101   :  { %2430 = vrsqrt.f32 %v543_v57  ;;  %v544_v53 = vadd.f32 1e-05, %v506_v9  ;;  %v393_v5 = vmul.f32 0.03125, %v337_v45  ;;  %v657_v39 = vmul.f32 %v2425_v60, %v619_v43  ;;  %v2610_v43 = vld [vmem:[%s4033_s0 + $0xd0] sm:$0xff] }
 0x102   :  { %v432_v40 = vmul.f32 %v3261_v51, %v3261_v51  ;;  %v340_v50 = vpop.xlane.xlu1 %339  ;;  %v696_v29 = vsel %vm595_vm2, %v656_v24, %v2606_v1  ;;  %v622_v57 = vsub.f32 %v2610_v43, %v3226_v46  ;;  %v2368_v46 = vld [vmem:[%s4036_s3 + $0x10] sm:$0xff]  }
 0x103   :  { %2432 = vrsqrt.f32 %v544_v53  ;;  %v469_v52 = vsub.f32 %v393_v5, %v431_v21  ;;  %v394_v0 = vmul.f32 0.03125, %v340_v50  ;;  %v697_v56 = vsel %vm595_vm2, %v657_v39, %v2607_v58  ;;  %2162 = vmatpush3.bf16.msra.mxu1 %v2364_v28  ;;  %v2611_v21 = vld [vmem:[%s4033_s0 + $0xd8] sm:$0xff] }
 0x104   :  { %v152_v23 = vpop.xlane.xlu0 %151  ;;  %v723_v54 = vpack.c.bf16 %v697_v56, %v696_v29  ;;  %2163 = vmatprep.subr.bf16.mxu1 %v2624_v26  ;;  %v623_v28 = vsub.f32 %v2611_v21, %v3235_v12 }
 0x105   :  { %v507_v55 = vmax.f32 %v469_v52, 0.0  ;;  %v470_v25 = vsub.f32 %v394_v0, %v432_v40  ;;  %v3280_v62 = vmul.f32 0.03125, %v152_v23  ;;  %v2369_v23 = vld [vmem:[%s4036_s3 + $0x8] sm:$0xff]  }
 0x106   :  { %v2427_v3 = vpop.eup %2426  ;;  %v155_v49 = vpop.xlane.xlu1 %154  ;;  %2026 = vmatmul.mubr.msk.bf16.gmra.mxu1 %vm785_vm3, %v723_v54 }
 0x107   :  { %v545_v10 = vadd.f32 1e-05, %v507_v55  ;;  %v508_v34 = vmax.f32 %v470_v25, 0.0  ;;  %v433_v8 = vmul.f32 %v3280_v62, %v3280_v62  ;;  %1002 = vmatprep.mubr.bf16.mxu1 %v2623_v59  ;;  %2164 = vmatpush3.bf16.msra.mxu1 %v2365_v38  ;;  %v3297_v15 = vmul.f32 0.03125, %v155_v49  ;;  %v2612_v49 = vld [vmem:[%s4033_s0 + $0xe0] sm:$0xff] }
 0x108   :  { %v2429_v11 = vpop.eup %2428  ;;  %v343_v14 = vpop.xlane.xlu0 %342  ;;  %v658_v22 = vmul.f32 %v2427_v3, %v620_v63  ;;  %2165 = vmatprep.subr.bf16.mxu1 %v2624_v26 }
 0x109   :  { %2434 = vrsqrt.f32 %v545_v10  ;;  %v546_v48 = vadd.f32 1e-05, %v508_v34  ;;  %v395_v33 = vmul.f32 0.03125, %v343_v14  ;;  %v659_v16 = vmul.f32 %v2429_v11, %v621_v6  ;;  %v2613_v10 = vld [vmem:[%s4033_s0 + $0xe8] sm:$0xff] }
 0x10a   :  { %v434_v20 = vmul.f32 %v3297_v15, %v3297_v15  ;;  %v346_v44 = vpop.xlane.xlu1 %345  ;;  %v698_v17 = vsel %vm595_vm2, %v658_v22, %v2608_v61  ;;  %v625_v34 = vsub.f32 %v2613_v10, %v3261_v51 }
 0x10b   :  { %2436 = vrsqrt.f32 %v546_v48  ;;  %v471_v35 = vsub.f32 %v395_v33, %v433_v8  ;;  %v396_v19 = vmul.f32 0.03125, %v346_v44  ;;  %v699_v2 = vsel %vm595_vm2, %v659_v16, %v2609_v32  ;;  %2166 = vmatpush3.bf16.msra.mxu1 %v2366_v7 }
 0x10c   :  { %v158_v18 = vpop.xlane.xlu0 %157  ;;  %v724_v42 = vpack.c.bf16 %v699_v2, %v698_v17  ;;  %2167 = vmatprep.subr.bf16.mxu1 %v2624_v26  ;;  %v624_v32 = vsub.f32 %v2612_v49, %v3248_v30  ;;  %v2370_v30 = vld [vmem:[%s4036_s3] sm:$0xff]  }
 0x10d   :  { %v509_v31 = vmax.f32 %v471_v35, 0.0  ;;  %v472_v36 = vsub.f32 %v396_v19, %v434_v20  ;;  %v3310_v41 = vmul.f32 0.03125, %v158_v18 }
 0x10e   :  { %v2431_v37 = vpop.eup %2430  ;;  %v161_v9 = vpop.xlane.xlu1 %160  ;;  %2027 = vmatmul.mubr.msk.bf16.gmra.mxu1 %vm785_vm3, %v724_v42 }
 0x10f   :  { %v547_v60 = vadd.f32 1e-05, %v509_v31  ;;  %v510_v45 = vmax.f32 %v472_v36, 0.0  ;;  %v435_v24 = vmul.f32 %v3310_v41, %v3310_v41  ;;  %1012 = vmatprep.mubr.bf16.mxu1 %v2623_v59  ;;  %2168 = vmatpush3.bf16.msra.mxu1 %v2367_v27  ;;  %v3327_v5 = vmul.f32 0.03125, %v161_v9 }
 0x110   :  { %v2433_v53 = vpop.eup %2432  ;;  %v349_v39 = vpop.xlane.xlu0 %348  ;;  %v660_v40 = vmul.f32 %v2431_v37, %v622_v57  ;;  %2169 = vmatprep.subr.bf16.mxu1 %v2624_v26  ;;  %v2614_v57 = vld [vmem:[%s4033_s0 + $0xf0] sm:$0xff] }
 0x111   :  { %2438 = vrsqrt.f32 %v547_v60  ;;  %v548_v12 = vadd.f32 1e-05, %v510_v45  ;;  %v397_v50 = vmul.f32 0.03125, %v349_v39  ;;  %v661_v1 = vmul.f32 %v2433_v53, %v623_v28  ;;  %v2615_v28 = vld [vmem:[%s4033_s0 + $0xf8] sm:$0xff] }
 0x112   :  { %v436_v29 = vmul.f32 %v3327_v5, %v3327_v5  ;;  %v352_v52 = vpop.xlane.xlu1 %351  ;;  %v700_v0 = vsel %vm595_vm2, %v660_v40, %v2610_v43  ;;  %v626_v9 = vsub.f32 %v2614_v57, %v3280_v62  ;;  %v627_v60 = vsub.f32 %v2615_v28, %v3297_v15 }
 0x113   :  { %2440 = vrsqrt.f32 %v548_v12  ;;  %v473_v58 = vsub.f32 %v397_v50, %v435_v24  ;;  %v398_v56 = vmul.f32 0.03125, %v352_v52  ;;  %v701_v38 = vsel %vm595_vm2, %v661_v1, %v2611_v21  ;;  %2170 = vmatpush3.bf16.msra.mxu1 %v2368_v46 }
 0x114   :  { %v164_v54 = vpop.xlane.xlu0 %163  ;;  %v725_v55 = vpack.c.bf16 %v701_v38, %v700_v0  ;;  %2171 = vmatprep.subr.bf16.mxu1 %v2624_v26 }
 0x115   :  { %v511_v25 = vmax.f32 %v473_v58, 0.0  ;;  %v474_v3 = vsub.f32 %v398_v56, %v436_v29  ;;  %v3340_v61 = vmul.f32 0.03125, %v164_v54 }
 0x116   :  { %v2435_v63 = vpop.eup %2434  ;;  %v167_v6 = vpop.xlane.xlu1 %166  ;;  %2028 = vmatmul.mubr.msk.bf16.gmra.mxu1 %vm785_vm3, %v725_v55 }
 0x117   :  { %v549_v8 = vadd.f32 1e-05, %v511_v25  ;;  %v512_v7 = vmax.f32 %v474_v3, 0.0  ;;  %v437_v11 = vmul.f32 %v3340_v61, %v3340_v61  ;;  %1022 = vmatprep.mubr.bf16.mxu1 %v2623_v59  ;;  %2172 = vmatpush3.bf16.msra.mxu1 %v2369_v23  ;;  %v3357_v22 = vmul.f32 0.03125, %v167_v6  ;;  %v2616_v23 = vld [vmem:[%s4033_s0 + $0x100] sm:$0xff] }
 0x118   :  { %v2437_v14 = vpop.eup %2436  ;;  %v355_v48 = vpop.xlane.xlu0 %354  ;;  %v662_v33 = vmul.f32 %v2435_v63, %v624_v32  ;;  %2173 = vmatprep.subr.bf16.mxu1 %v2624_v26  ;;  %v628_v54 = vsub.f32 %v2616_v23, %v3310_v41  ;;  %v2617_v63 = vld [vmem:[%s4033_s0 + $0x108] sm:$0xff] }
 0x119   :  { %2442 = vrsqrt.f32 %v549_v8  ;;  %v550_v51 = vadd.f32 1e-05, %v512_v7  ;;  %v399_v16 = vmul.f32 0.03125, %v355_v48  ;;  %v663_v20 = vmul.f32 %v2437_v14, %v625_v34 }
 0x11a   :  { %v438_v44 = vmul.f32 %v3357_v22, %v3357_v22  ;;  %v358_v17 = vpop.xlane.xlu1 %357  ;;  %v702_v35 = vsel %vm595_vm2, %v662_v33, %v2612_v49  ;;  %v629_v49 = vsub.f32 %v2617_v63, %v3327_v5  ;;  %v2618_v5 = vld [vmem:[%s4033_s0 + $0x110] sm:$0xff]  ;;  %v2619_v33 = vld [vmem:[%s4033_s0 + $0x118] sm:$0xff] }
 0x11b   :  { %2444 = vrsqrt.f32 %v550_v51  ;;  %v475_v19 = vsub.f32 %v399_v16, %v437_v11  ;;  %v400_v2 = vmul.f32 0.03125, %v358_v17  ;;  %v703_v27 = vsel %vm595_vm2, %v663_v20, %v2613_v10  ;;  %2174 = vmatpush3.bf16.msra.mxu1 %v2370_v30 }
 0x11c   :  { %v170_v18 = vpop.xlane.xlu0 %169  ;;  %v726_v42 = vpack.c.bf16 %v703_v27, %v702_v35  ;;  %v630_v14 = vsub.f32 %v2618_v5, %v3340_v61  ;;  %v631_v51 = vsub.f32 %v2619_v33, %v3357_v22  ;;  %v2621_v22 = vld [vmem:[%s4033_s0 + $0x128] sm:$0xff] }
 0x11d   :  { %v513_v31 = vmax.f32 %v475_v19, 0.0  ;;  %v476_v36 = vsub.f32 %v400_v2, %v438_v44  ;;  %v3368_v37 = vmul.f32 0.03125, %v170_v18  ;;  %v2620_v19 = vld [vmem:[%s4033_s0 + $0x120] sm:$0xff] }
 0x11e   :  { %v2439_v43 = vpop.eup %2438  ;;  %v173_v21 = vpop.xlane.xlu1 %172  ;;  %2029 = vmatmul.mubr.msk.bf16.gmra.mxu1 %vm785_vm3, %v726_v42 }
 0x11f   :  { %v551_v45 = vadd.f32 1e-05, %v513_v31  ;;  %v514_v24 = vmax.f32 %v476_v36, 0.0  ;;  %v439_v46 = vmul.f32 %v3368_v37, %v3368_v37  ;;  %1032 = vmatprep.mubr.bf16.mxu1 %v2623_v59  ;;  %v212_v39 = vmul.f32 0.03125, %v173_v21 }
 0x120   :  { %v2441_v53 = vpop.eup %2440  ;;  %v361_v40 = vpop.xlane.xlu0 %360  ;;  %v664_v62 = vmul.f32 %v2439_v43, %v626_v9  ;;  %v632_v2 = vsub.f32 %v2620_v19, %v3368_v37  ;;  %v742_v9 = vsub.s32 0, %v2818_v4 }
 0x121   :  { %2446 = vrsqrt.f32 %v551_v45  ;;  %v552_v12 = vadd.f32 1e-05, %v514_v24  ;;  %v401_v50 = vmul.f32 0.03125, %v361_v40  ;;  %v665_v1 = vmul.f32 %v2441_v53, %v627_v60 }
 0x122   :  { %v440_v29 = vmul.f32 %v212_v39, %v212_v39  ;;  %v364_v52 = vpop.xlane.xlu1 %363  ;;  %v704_v15 = vsel %vm595_vm2, %v664_v62, %v2614_v57  ;;  %v633_v18 = vsub.f32 %v2621_v22, %v212_v39 }
 0x123   :  { %2448 = vrsqrt.f32 %v552_v12  ;;  %v477_v0 = vsub.f32 %v401_v50, %v439_v46  ;;  %v402_v58 = vmul.f32 0.03125, %v364_v52  ;;  %v705_v56 = vsel %vm595_vm2, %v665_v1, %v2615_v28 }
 0x124   :  { %v727_v38 = vpack.c.bf16 %v705_v56, %v704_v15 }
 0x125   :  { %v515_v55 = vmax.f32 %v477_v0, 0.0  ;;  %v478_v25 = vsub.f32 %v402_v58, %v440_v29 }
 0x126   :  { %v2443_v3 = vpop.eup %2442  ;;  %2030 = vmatmul.mubr.msk.bf16.gmra.mxu1 %vm785_vm3, %v727_v38 }
 0x127   :  { %v553_v32 = vadd.f32 1e-05, %v515_v55  ;;  %v516_v6 = vmax.f32 %v478_v25, 0.0  ;;  %1042 = vmatprep.mubr.bf16.mxu1 %v2623_v59  ;;  %v666_v10 = vmul.f32 %v2443_v3, %v628_v54 }
 0x128   :  { %v2445_v34 = vpop.eup %2444 }
 0x129   :  { %2450 = vrsqrt.f32 %v553_v32  ;;  %v554_v8 = vadd.f32 1e-05, %v516_v6  ;;  %v667_v41 = vmul.f32 %v2445_v34, %v629_v49  ;;  %v706_v7 = vsel %vm595_vm2, %v666_v10, %v2616_v23 }
 0x12b   :  { %2452 = vrsqrt.f32 %v554_v8  ;;  %v707_v11 = vsel %vm595_vm2, %v667_v41, %v2617_v63 }
 0x12c   :  { %v728_v30 = vpack.c.bf16 %v707_v11, %v706_v7 }
 0x12e   :  { %v2447_v48 = vpop.eup %2446  ;;  %2031 = vmatmul.mubr.msk.bf16.gmra.mxu1 %vm785_vm3, %v728_v30 }
 0x12f   :  { %1052 = vmatprep.mubr.bf16.mxu1 %v2623_v59  ;;  %v668_v16 = vmul.f32 %v2447_v48, %v630_v14 }
 0x130   :  { %v2449_v20 = vpop.eup %2448 }
 0x131   :  { %v669_v44 = vmul.f32 %v2449_v20, %v631_v51  ;;  %v708_v17 = vsel %vm595_vm2, %v668_v16, %v2618_v5 }
 0x133   :  { %v709_v61 = vsel %vm595_vm2, %v669_v44, %v2619_v33 }
 0x134   :  { %v729_v35 = vpack.c.bf16 %v709_v61, %v708_v17 }
 0x136   :  { %v2451_v27 = vpop.eup %2450  ;;  %2032 = vmatmul.mubr.msk.bf16.gmra.mxu1 %vm785_vm3, %v729_v35 }
 0x137   :  { %1062 = vmatprep.mubr.bf16.mxu1 %v2623_v59  ;;  %v670_v42 = vmul.f32 %v2451_v27, %v632_v2  ;;  %v2622_v59 = vld [vmem:[%s4035_s2] sm:$0x3] }
 0x138   :  { %v2453_v31 = vpop.eup %2452  ;;  %v3434_v21 = vrot.slane %v2622_v59, %v742_v9 }
 0x139   :  { %v671_v36 = vmul.f32 %v2453_v31, %v633_v18  ;;  %v710_v43 = vsel %vm595_vm2, %v670_v42, %v2620_v19 }
 0x13b   :  { %v711_v57 = vsel %vm595_vm2, %v671_v36, %v2621_v22 }
 0x13c   :  { %v730_v37 = vpack.c.bf16 %v711_v57, %v710_v43 }
 0x13e   :  { %2033 = vmatmul.mubr.msk.bf16.gmra.mxu1 %vm785_vm3, %v730_v37 }
 0x13f   :  { %2175 = vmatprep.mubr.msk.bf16.mxu1 %vm2625_vm4, %v2624_v26 }
 0x16e   :  { %v884_v28 = vpop.f32.mrf.mxu0 }
 0x16f   :  { %v3437_v60 = vadd.f32 %v884_v28, %v3434_v21 }
 0x170   :  { %v3439_v47 = vpop.f32.mrf.mxu0 }
 0x171   :  { %v2034_v45 = vmul.f32 -1.442695, %v3437_v60 }
 0x172   :  { %v888_v24 = vpop.f32.mrf.mxu0 }
 0x173   :  { %2454 = vpow2.f32 %v2034_v45  ;;  %v889_v46 = vadd.f32 %v888_v24, %v3434_v21 }
 0x174   :  { %v3443_v53 = vpop.f32.mrf.mxu0 }
 0x175   :  { %v2035_v4 = vmul.f32 -1.442695, %v889_v46 }
 0x176   :  { %v894_v39 = vpop.f32.mrf.mxu0 }
 0x177   :  { %2456 = vpow2.f32 %v2035_v4  ;;  %v3446_v40 = vadd.f32 %v894_v39, %v3434_v21 }
 0x178   :  { %v3448_v62 = vpop.f32.mrf.mxu0 }
 0x179   :  { %v2036_v12 = vmul.f32 -1.442695, %v3446_v40 }
 0x17a   :  { %v898_v50 = vpop.f32.mrf.mxu0 }
 0x17b   :  { %2458 = vpow2.f32 %v2036_v12  ;;  %v3452_v1 = vadd.f32 %v898_v50, %v3434_v21 }
 0x17c   :  { %v3454_v29 = vpop.f32.mrf.mxu0 }
 0x17d   :  { %v2037_v52 = vmul.f32 -1.442695, %v3452_v1 }
 0x17e   :  { %v904_v15 = vpop.f32.mrf.mxu0 }
 0x17f   :  { %2460 = vpow2.f32 %v2037_v52  ;;  %v3458_v0 = vadd.f32 %v904_v15, %v3434_v21 }
 0x180   :  { %v2455_v58 = vpop.eup %2454  ;;  %v3460_v56 = vpop.f32.mrf.mxu0 }
 0x181   :  { %v1187_v38 = vadd.f32 1.0, %v2455_v58  ;;  %v2038_v23 = vmul.f32 -1.442695, %v3458_v0 }
 0x182   :  { %v908_v54 = vpop.f32.mrf.mxu0 }
 0x183   :  { %v3464_v55 = vadd.f32 %v908_v54, %v3434_v21  ;;  %2462 = vpow2.f32 %v2038_v23 }
 0x184   :  { %v2457_v25 = vpop.eup %2456  ;;  %v3466_v3 = vpop.f32.mrf.mxu0  ;;  %2464 = vrcp.f32 %v1187_v38 }
 0x185   :  { %v1188_v63 = vadd.f32 1.0, %v2457_v25  ;;  %v2039_v49 = vmul.f32 -1.442695, %v3464_v55 }
 0x186   :  { %v914_v32 = vpop.f32.mrf.mxu0 }
 0x187   :  { %2466 = vrcp.f32 %v1188_v63  ;;  %v3470_v6 = vadd.f32 %v914_v32, %v3434_v21 }
 0x188   :  { %v2459_v10 = vpop.eup %2458  ;;  %2468 = vpow2.f32 %v2039_v49  ;;  %v3472_v34 = vpop.f32.mrf.mxu0 }
 0x189   :  { %v1189_v8 = vadd.f32 1.0, %v2459_v10  ;;  %v2040_v41 = vmul.f32 -1.442695, %v3470_v6 }
 0x18a   :  { %v918_v7 = vpop.f32.mrf.mxu0 }
 0x18b   :  { %v3476_v11 = vadd.f32 %v918_v7, %v3434_v21  ;;  %2470 = vpow2.f32 %v2040_v41 }
 0x18c   :  { %v2461_v30 = vpop.eup %2460  ;;  %v3478_v5 = vpop.f32.mrf.mxu0  ;;  %2472 = vrcp.f32 %v1189_v8 }
 0x18d   :  { %v1190_v14 = vadd.f32 1.0, %v2461_v30  ;;  %v2041_v48 = vmul.f32 -1.442695, %v3476_v11 }
 0x18e   :  { %v924_v33 = vpop.f32.mrf.mxu0 }
 0x18f   :  { %2474 = vrcp.f32 %v1190_v14  ;;  %v3482_v51 = vadd.f32 %v924_v33, %v3434_v21 }
 0x190   :  { %2476 = vpow2.f32 %v2041_v48  ;;  %v3484_v16 = vpop.f32.mrf.mxu0  ;;  %v2463_v20 = vpop.eup %2462 }
 0x191   :  { %v2042_v44 = vmul.f32 -1.442695, %v3482_v51  ;;  %v2465_v17 = vpop.eup %2464  ;;  %v1191_v61 = vadd.f32 1.0, %v2463_v20 }
 0x192   :  { %v928_v35 = vpop.f32.mrf.mxu0  ;;  %v1301_v18 = vmul.f32 %v2465_v17, %v3437_v60  ;;  %v2371_v17 = vld [vmem:[%s4037_s4 + $0x30] sm:$0xff]  }
 0x193   :  { %2478 = vpow2.f32 %v2042_v44  ;;  %v3488_v19 = vadd.f32 %v928_v35, %v3434_v21  ;;  %2252 = vmatpush3.bf16.msra.mxu0 %v2371_v17 }
 0x194   :  { %v2467_v2 = vpop.eup %2466  ;;  %v3490_v27 = vpop.f32.mrf.mxu0  ;;  %2480 = vrcp.f32 %v1191_v61  ;;  %2253 = vmatprep.subr.bf16.mxu0 %v2624_v26 }
 0x195   :  { %v2469_v22 = vpop.eup %2468  ;;  %v1302_v42 = vmul.f32 %v2467_v2, %v889_v46  ;;  %v2043_v31 = vmul.f32 -1.442695, %v3488_v19 }
 0x196   :  { %v1192_v36 = vadd.f32 1.0, %v2469_v22  ;;  %v934_v43 = vpop.f32.mrf.mxu0 }
 0x197   :  { %v1339_v57 = vpack.c.bf16 %v1302_v42, %v1301_v18  ;;  %2482 = vpow2.f32 %v2043_v31  ;;  %v3495_v37 = vadd.f32 %v934_v43, %v3434_v21 }
 0x198   :  { %2484 = vrcp.f32 %v1192_v36  ;;  %v3497_v9 = vpop.f32.mrf.mxu0  ;;  %v2471_v59 = vpop.eup %2470 }
 0x199   :  { %v2044_v28 = vmul.f32 -1.442695, %v3495_v37  ;;  %2176 = vmatmul.mubr.bf16.vlgmr.msra.gmra.mxu1 %v1339_v57  ;;  %v2473_v45 = vpop.eup %2472  ;;  %v1193_v60 = vadd.f32 1.0, %v2471_v59 }
 0x19a   :  { %v938_v24 = vpop.f32.mrf.mxu0  ;;  %2179 = vmatprep.mubr.msk.bf16.mxu1 %vm2625_vm4, %v2624_v26  ;;  %v1303_v50 = vmul.f32 %v2473_v45, %v3446_v40  ;;  %v2373_v45 = vld [vmem:[%s4037_s4 + $0x20] sm:$0xff]  }
 0x19b   :  { %2486 = vpow2.f32 %v2044_v28  ;;  %v3503_v46 = vadd.f32 %v938_v24, %v3434_v21 }
 0x19c   :  { %v2475_v4 = vpop.eup %2474  ;;  %v3505_v39 = vpop.f32.mrf.mxu0  ;;  %2488 = vrcp.f32 %v1193_v60 }
 0x19d   :  { %v2477_v12 = vpop.eup %2476  ;;  %v1304_v52 = vmul.f32 %v2475_v4, %v3452_v1  ;;  %v2045_v15 = vmul.f32 -1.442695, %v3503_v46 }
 0x19e   :  { %v1194_v58 = vadd.f32 1.0, %v2477_v12  ;;  %v944_v38 = vpop.f32.mrf.mxu0 }
 0x19f   :  { %2490 = vpow2.f32 %v2045_v15  ;;  %v3511_v23 = vadd.f32 %v944_v38, %v3434_v21  ;;  %v1340_v54 = vpack.c.bf16 %v1304_v52, %v1303_v50 }
 0x1a0   :  { %v2479_v25 = vpop.eup %2478  ;;  %2492 = vrcp.f32 %v1194_v58  ;;  %v3513_v63 = vpop.f32.mrf.mxu0 }
 0x1a1   :  { %v1195_v49 = vadd.f32 1.0, %v2479_v25  ;;  %v2046_v32 = vmul.f32 -1.442695, %v3511_v23  ;;  %2180 = vmatmul.mubr.bf16.gmra.mxu1 %v1340_v54  ;;  %v2481_v1 = vpop.eup %2480 }
 0x1a2   :  { %v948_v40 = vpop.f32.mrf.mxu0  ;;  %2183 = vmatprep.mubr.msk.bf16.mxu1 %vm2625_vm4, %v2624_v26  ;;  %v1305_v48 = vmul.f32 %v2481_v1, %v3458_v0  ;;  %v2372_v0 = vld [vmem:[%s4037_s4 + $0x28] sm:$0xff]  }
 0x1a3   :  { %v3519_v10 = vadd.f32 %v948_v40, %v3434_v21  ;;  %2494 = vpow2.f32 %v2046_v32  ;;  %2254 = vmatpush3.bf16.msra.mxu0 %v2372_v0 }
 0x1a4   :  { %v2483_v8 = vpop.eup %2482  ;;  %v3521_v41 = vpop.f32.mrf.mxu0  ;;  %2496 = vrcp.f32 %v1195_v49  ;;  %2255 = vmatprep.subr.bf16.mxu0 %v2624_v26 }
 0x1a5   :  { %v2485_v7 = vpop.eup %2484  ;;  %v1196_v30 = vadd.f32 1.0, %v2483_v8  ;;  %v2047_v14 = vmul.f32 -1.442695, %v3519_v10 }
 0x1a6   :  { %v1306_v33 = vmul.f32 %v2485_v7, %v3464_v55  ;;  %v954_v20 = vpop.f32.mrf.mxu0 }
 0x1a7   :  { %2498 = vrcp.f32 %v1196_v30  ;;  %v3527_v44 = vadd.f32 %v954_v20, %v3434_v21  ;;  %2256 = vmatpush3.bf16.msra.mxu0 %v2373_v45  ;;  %v2375_v30 = vld [vmem:[%s4037_s4 + $0x10] sm:$0xff]  }
 0x1a8   :  { %v2487_v61 = vpop.eup %2486  ;;  %2500 = vpow2.f32 %v2047_v14  ;;  %v3532_v35 = vpop.f32.mrf.mxu0  ;;  %v1341_v2 = vpack.c.bf16 %v1306_v33, %v1305_v48  ;;  %2257 = vmatprep.subr.bf16.mxu0 %v2624_v26 }
 0x1a9   :  { %v1197_v22 = vadd.f32 1.0, %v2487_v61  ;;  %v2048_v18 = vmul.f32 -1.442695, %v3527_v44  ;;  %v2489_v42 = vpop.eup %2488  ;;  %v2376_v61 = vld [vmem:[%s4037_s4 + $0x8] sm:$0xff]  }
 0x1aa   :  { %2184 = vmatmul.mubr.bf16.gmra.mxu1 %v1341_v2  ;;  %v958_v55 = vpop.f32.mrf.mxu0  ;;  %v1307_v60 = vmul.f32 %v2489_v42, %v3470_v6  ;;  %v2374_v6 = vld [vmem:[%s4037_s4 + $0x18] sm:$0xff]  }
 0x1ab   :  { %v3540_v31 = vadd.f32 %v958_v55, %v3434_v21  ;;  %2187 = vmatprep.mubr.msk.bf16.mxu1 %vm2625_vm4, %v2624_v26  ;;  %2502 = vpow2.f32 %v2048_v18  ;;  %2258 = vmatpush3.bf16.msra.mxu0 %v2374_v6 }
 0x1ac   :  { %v2491_v36 = vpop.eup %2490  ;;  %v3544_v43 = vpop.f32.mrf.mxu0  ;;  %2504 = vrcp.f32 %v1197_v22  ;;  %2259 = vmatprep.subr.bf16.mxu0 %v2624_v26 }
 0x1ad   :  { %v2493_v57 = vpop.eup %2492  ;;  %v1198_v59 = vadd.f32 1.0, %v2491_v36  ;;  %v2049_v28 = vmul.f32 -1.442695, %v3540_v31 }
 0x1ae   :  { %v1308_v24 = vmul.f32 %v2493_v57, %v3476_v11  ;;  %v964_v4 = vpop.f32.mrf.mxu0 }
 0x1af   :  { %2506 = vrcp.f32 %v1198_v59  ;;  %v3554_v12 = vadd.f32 %v964_v4, %v3434_v21  ;;  %2260 = vmatpush3.bf16.msra.mxu0 %v2375_v30 }
 0x1b0   :  { %2508 = vpow2.f32 %v2049_v28  ;;  %v3556_v50 = vpop.f32.mrf.mxu0  ;;  %v1342_v52 = vpack.c.bf16 %v1308_v24, %v1307_v60  ;;  %v2495_v15 = vpop.eup %2494  ;;  %2261 = vmatprep.subr.bf16.mxu0 %v2624_v26  ;;  %v2377_v28 = vld [vmem:[%s4037_s4] sm:$0xff]  }
 0x1b1   :  { %v2050_v58 = vmul.f32 -1.442695, %v3554_v12  ;;  %v2497_v11 = vpop.eup %2496  ;;  %v1199_v38 = vadd.f32 1.0, %v2495_v15 }
 0x1b2   :  { %2188 = vmatmul.mubr.bf16.gmra.mxu1 %v1342_v52  ;;  %v968_v54 = vpop.f32.mrf.mxu0  ;;  %v1309_v1 = vmul.f32 %v2497_v11, %v3482_v51 }
 0x1b3   :  { %2510 = vpow2.f32 %v2050_v58  ;;  %v3564_v25 = vadd.f32 %v968_v54, %v3434_v21  ;;  %2191 = vmatprep.mubr.msk.bf16.mxu1 %vm2625_vm4, %v2624_v26  ;;  %2262 = vmatpush3.bf16.msra.mxu0 %v2376_v61 }
 0x1b4   :  { %v2499_v49 = vpop.eup %2498  ;;  %v3568_v32 = vpop.f32.mrf.mxu0  ;;  %2512 = vrcp.f32 %v1199_v38  ;;  %2263 = vmatprep.subr.bf16.mxu0 %v2624_v26 }
 0x1b5   :  { %v2501_v40 = vpop.eup %2500  ;;  %v1310_v8 = vmul.f32 %v2499_v49, %v3488_v19  ;;  %v2051_v7 = vmul.f32 -1.442695, %v3564_v25 }
 0x1b6   :  { %v1200_v14 = vadd.f32 1.0, %v2501_v40  ;;  %v974_v48 = vpop.f32.mrf.mxu0 }
 0x1b7   :  { %2514 = vpow2.f32 %v2051_v7  ;;  %v3578_v33 = vadd.f32 %v974_v48, %v3434_v21  ;;  %v1343_v20 = vpack.c.bf16 %v1310_v8, %v1309_v1  ;;  %2264 = vmatpush3.bf16.msra.mxu0 %v2377_v28 }
 0x1b8   :  { %2516 = vrcp.f32 %v1200_v14  ;;  %v3580_v51 = vpop.f32.mrf.mxu0  ;;  %v2503_v19 = vpop.eup %2502 }
 0x1b9   :  { %v2052_v17 = vmul.f32 -1.442695, %v3578_v33  ;;  %v2505_v2 = vpop.eup %2504  ;;  %v1201_v22 = vadd.f32 1.0, %v2503_v19 }
 0x1ba   :  { %2192 = vmatmul.mubr.bf16.gmra.mxu1 %v1343_v20  ;;  %v978_v18 = vpop.f32.mrf.mxu0  ;;  %v1311_v36 = vmul.f32 %v2505_v2, %v3495_v37 }
 0x1bb   :  { %2518 = vpow2.f32 %v2052_v17  ;;  %v3588_v0 = vadd.f32 %v978_v18, %v3434_v21  ;;  %2195 = vmatprep.mubr.msk.bf16.mxu1 %vm2625_vm4, %v2624_v26 }
 0x1bc   :  { %v2507_v55 = vpop.eup %2506  ;;  %2520 = vrcp.f32 %v1201_v22 }
 0x1bd   :  { %v2509_v42 = vpop.eup %2508  ;;  %v1312_v57 = vmul.f32 %v2507_v55, %v3503_v46  ;;  %v2053_v59 = vmul.f32 -1.442695, %v3588_v0 }
 0x1be   :  { %v1202_v45 = vadd.f32 1.0, %v2509_v42  ;;  %v984_v60 = vpop.f32.mrf.mxu1 }
 0x1bf   :  { %2522 = vpow2.f32 %v2053_v59  ;;  %v3600_v24 = vadd.f32 %v984_v60, %v3434_v21  ;;  %v1344_v4 = vpack.c.bf16 %v1312_v57, %v1311_v36 }
 0x1c0   :  { %v2511_v37 = vpop.eup %2510  ;;  %2524 = vrcp.f32 %v1202_v45  ;;  %v3602_v46 = vpop.f32.mrf.mxu1 }
 0x1c1   :  { %v1203_v52 = vadd.f32 1.0, %v2511_v37  ;;  %v2054_v15 = vmul.f32 -1.442695, %v3600_v24  ;;  %v2513_v6 = vpop.eup %2512 }
 0x1c2   :  { %2196 = vmatmul.mubr.bf16.gmra.mxu1 %v1344_v4  ;;  %v988_v58 = vpop.f32.mrf.mxu1  ;;  %v1313_v8 = vmul.f32 %v2513_v6, %v3511_v23 }
 0x1c3   :  { %v3606_v11 = vadd.f32 %v988_v58, %v3434_v21  ;;  %2199 = vmatprep.mubr.msk.bf16.mxu1 %vm2625_vm4, %v2624_v26  ;;  %2526 = vpow2.f32 %v2054_v15 }
 0x1c4   :  { %v2515_v38 = vpop.eup %2514  ;;  %v3610_v54 = vpop.f32.mrf.mxu1  ;;  %2528 = vrcp.f32 %v1203_v52 }
 0x1c5   :  { %v2517_v49 = vpop.eup %2516  ;;  %v1204_v40 = vadd.f32 1.0, %v2515_v38  ;;  %v2055_v1 = vmul.f32 -1.442695, %v3606_v11 }
 0x1c6   :  { %v1314_v7 = vmul.f32 %v2517_v49, %v3519_v10  ;;  %v994_v30 = vpop.f32.mrf.mxu1 }
 0x1c7   :  { %2530 = vrcp.f32 %v1204_v40  ;;  %v3616_v14 = vadd.f32 %v994_v30, %v3434_v21 }
 0x1c8   :  { %v2519_v48 = vpop.eup %2518  ;;  %2532 = vpow2.f32 %v2055_v1  ;;  %v3618_v20 = vpop.f32.mrf.mxu1  ;;  %v1345_v19 = vpack.c.bf16 %v1314_v7, %v1313_v8 }
 0x1c9   :  { %v1205_v17 = vadd.f32 1.0, %v2519_v48  ;;  %v2056_v61 = vmul.f32 -1.442695, %v3616_v14  ;;  %v2521_v22 = vpop.eup %2520 }
 0x1ca   :  { %2200 = vmatmul.mubr.bf16.gmra.mxu1 %v1345_v19  ;;  %v998_v2 = vpop.f32.mrf.mxu1  ;;  %v1315_v57 = vmul.f32 %v2521_v22, %v3527_v44 }
 0x1cb   :  { %v3622_v23 = vadd.f32 %v998_v2, %v3434_v21  ;;  %2203 = vmatprep.mubr.msk.bf16.mxu1 %vm2625_vm4, %v2624_v26  ;;  %2534 = vpow2.f32 %v2056_v61 }
 0x1cc   :  { %v2523_v10 = vpop.eup %2522  ;;  %v3626_v18 = vpop.f32.mrf.mxu1  ;;  %2536 = vrcp.f32 %v1205_v17 }
 0x1cd   :  { %v2525_v55 = vpop.eup %2524  ;;  %v1206_v42 = vadd.f32 1.0, %v2523_v10  ;;  %v2057_v36 = vmul.f32 -1.442695, %v3622_v23 }
 0x1ce   :  { %v1316_v59 = vmul.f32 %v2525_v55, %v3540_v31  ;;  %v1004_v28 = vpop.f32.mrf.mxu1 }
 0x1cf   :  { %2538 = vrcp.f32 %v1206_v42  ;;  %v3632_v45 = vadd.f32 %v1004_v28, %v3434_v21 }
 0x1d0   :  { %2540 = vpow2.f32 %v2057_v36  ;;  %v3634_v60 = vpop.f32.mrf.mxu1  ;;  %v1346_v4 = vpack.c.bf16 %v1316_v59, %v1315_v57  ;;  %v2527_v37 = vpop.eup %2526 }
 0x1d1   :  { %v2058_v52 = vmul.f32 -1.442695, %v3632_v45  ;;  %v2529_v15 = vpop.eup %2528  ;;  %v1207_v58 = vadd.f32 1.0, %v2527_v37 }
 0x1d2   :  { %2204 = vmatmul.mubr.bf16.gmra.mxu1 %v1346_v4  ;;  %v1008_v6 = vpop.f32.mrf.mxu1  ;;  %v1317_v40 = vmul.f32 %v2529_v15, %v3554_v12 }
 0x1d3   :  { %2542 = vpow2.f32 %v2058_v52  ;;  %v3638_v44 = vadd.f32 %v1008_v6, %v3434_v21  ;;  %2207 = vmatprep.mubr.msk.bf16.mxu1 %vm2625_vm4, %v2624_v26 }
 0x1d4   :  { %v2531_v31 = vpop.eup %2530  ;;  %v3642_v38 = vpop.f32.mrf.mxu1  ;;  %2544 = vrcp.f32 %v1207_v58 }
 0x1d5   :  { %v2533_v49 = vpop.eup %2532  ;;  %v1318_v1 = vmul.f32 %v2531_v31, %v3564_v25  ;;  %v2059_v8 = vmul.f32 -1.442695, %v3638_v44 }
 0x1d6   :  { %v1208_v7 = vadd.f32 1.0, %v2533_v49  ;;  %v1014_v30 = vpop.f32.mrf.mxu1 }
 0x1d7   :  { %2546 = vpow2.f32 %v2059_v8  ;;  %v3648_v48 = vadd.f32 %v1014_v30, %v3434_v21  ;;  %v1347_v19 = vpack.c.bf16 %v1318_v1, %v1317_v40 }
 0x1d8   :  { %2548 = vrcp.f32 %v1208_v7  ;;  %v3650_v17 = vpop.f32.mrf.mxu1  ;;  %v2535_v61 = vpop.eup %2534 }
 0x1d9   :  { %v2060_v2 = vmul.f32 -1.442695, %v3648_v48  ;;  %v2537_v22 = vpop.eup %2536  ;;  %v1209_v12 = vadd.f32 1.0, %v2535_v61 }
 0x1da   :  { %2208 = vmatmul.mubr.bf16.gmra.mxu1 %v1347_v19  ;;  %v1018_v25 = vpop.f32.mrf.mxu1  ;;  %v1319_v57 = vmul.f32 %v2537_v22, %v3578_v33 }
 0x1db   :  { %2550 = vpow2.f32 %v2060_v2  ;;  %v3654_v10 = vadd.f32 %v1018_v25, %v3434_v21  ;;  %2211 = vmatprep.mubr.msk.bf16.mxu1 %vm2625_vm4, %v2624_v26 }
 0x1dc   :  { %v2539_v55 = vpop.eup %2538  ;;  %v3658_v42 = vpop.f32.mrf.mxu1  ;;  %2552 = vrcp.f32 %v1209_v12 }
 0x1dd   :  { %v2541_v36 = vpop.eup %2540  ;;  %v1320_v59 = vmul.f32 %v2539_v55, %v3588_v0  ;;  %v2061_v28 = vmul.f32 -1.442695, %v3654_v10 }
 0x1de   :  { %v1210_v4 = vadd.f32 1.0, %v2541_v36  ;;  %v1024_v37 = vpop.f32.mrf.mxu1 }
 0x1df   :  { %2554 = vpow2.f32 %v2061_v28  ;;  %v3664_v52 = vadd.f32 %v1024_v37, %v3434_v21  ;;  %v1348_v15 = vpack.c.bf16 %v1320_v59, %v1319_v57 }
 0x1e0   :  { %v2543_v58 = vpop.eup %2542  ;;  %2556 = vrcp.f32 %v1210_v4  ;;  %v3666_v6 = vpop.f32.mrf.mxu1 }
 0x1e1   :  { %v1211_v31 = vadd.f32 1.0, %v2543_v58  ;;  %v2062_v49 = vmul.f32 -1.442695, %v3664_v52  ;;  %v2545_v0 = vpop.eup %2544 }
 0x1e2   :  { %2212 = vmatmul.mubr.bf16.gmra.mxu1 %v1348_v15  ;;  %v1028_v33 = vpop.f32.mrf.mxu1  ;;  %v1321_v61 = vmul.f32 %v2545_v0, %v3600_v24 }
 0x1e3   :  { %v3670_v40 = vadd.f32 %v1028_v33, %v3434_v21  ;;  %2215 = vmatprep.mubr.msk.bf16.mxu1 %vm2625_vm4, %v2624_v26  ;;  %2558 = vpow2.f32 %v2062_v49 }
 0x1e4   :  { %v2547_v1 = vpop.eup %2546  ;;  %v3674_v8 = vpop.f32.mrf.mxu1  ;;  %2560 = vrcp.f32 %v1211_v31 }
 0x1e5   :  { %v2549_v7 = vpop.eup %2548  ;;  %v1212_v30 = vadd.f32 1.0, %v2547_v1  ;;  %v2063_v19 = vmul.f32 -1.442695, %v3670_v40 }
 0x1e6   :  { %v1322_v2 = vmul.f32 %v2549_v7, %v3606_v11  ;;  %v1034_v22 = vpop.f32.mrf.mxu1 }
 0x1e7   :  { %2562 = vrcp.f32 %v1212_v30  ;;  %v3680_v12 = vadd.f32 %v1034_v22, %v3434_v21 }
 0x1e8   :  { %v2551_v25 = vpop.eup %2550  ;;  %2564 = vpow2.f32 %v2063_v19  ;;  %v3682_v55 = vpop.f32.mrf.mxu1  ;;  %v1349_v36 = vpack.c.bf16 %v1322_v2, %v1321_v61 }
 0x1e9   :  { %v1213_v57 = vadd.f32 1.0, %v2551_v25  ;;  %v2064_v59 = vmul.f32 -1.442695, %v3680_v12  ;;  %v2553_v4 = vpop.eup %2552 }
 0x1ea   :  { %2216 = vmatmul.mubr.bf16.gmra.mxu1 %v1349_v36  ;;  %v1038_v28 = vpop.f32.mrf.mxu1  ;;  %v1323_v49 = vmul.f32 %v2553_v4, %v3616_v14 }
 0x1eb   :  { %v3686_v24 = vadd.f32 %v1038_v28, %v3434_v21  ;;  %2219 = vmatprep.mubr.msk.bf16.mxu1 %vm2625_vm4, %v2624_v26  ;;  %2566 = vpow2.f32 %v2064_v59 }
 0x1ec   :  { %v2555_v11 = vpop.eup %2554  ;;  %v3690_v37 = vpop.f32.mrf.mxu1  ;;  %2568 = vrcp.f32 %v1213_v57 }
 0x1ed   :  { %v2557_v15 = vpop.eup %2556  ;;  %v1214_v58 = vadd.f32 1.0, %v2555_v11  ;;  %v2065_v31 = vmul.f32 -1.442695, %v3686_v24 }
 0x1ee   :  { %v1324_v33 = vmul.f32 %v2557_v15, %v3622_v23  ;;  %v1044_v0 = vpop.f32.mrf.mxu1 }
 0x1ef   :  { %2570 = vrcp.f32 %v1214_v58  ;;  %v3696_v1 = vadd.f32 %v1044_v0, %v3434_v21 }
 0x1f0   :  { %2572 = vpow2.f32 %v2065_v31  ;;  %v3698_v7 = vpop.f32.mrf.mxu1  ;;  %v1350_v30 = vpack.c.bf16 %v1324_v33, %v1323_v49  ;;  %v2559_v19 = vpop.eup %2558 }
 0x1f1   :  { %v2066_v61 = vmul.f32 -1.442695, %v3696_v1  ;;  %v2561_v2 = vpop.eup %2560  ;;  %v1215_v22 = vadd.f32 1.0, %v2559_v19 }
 0x1f2   :  { %2220 = vmatmul.mubr.bf16.gmra.mxu1 %v1350_v30  ;;  %v1048_v25 = vpop.f32.mrf.mxu1  ;;  %v1325_v59 = vmul.f32 %v2561_v2, %v3632_v45 }
 0x1f3   :  { %2574 = vpow2.f32 %v2066_v61  ;;  %v3702_v14 = vadd.f32 %v1048_v25, %v3434_v21  ;;  %2223 = vmatprep.mubr.msk.bf16.mxu1 %vm2625_vm4, %v2624_v26 }
 0x1f4   :  { %v2563_v23 = vpop.eup %2562  ;;  %v3706_v36 = vpop.f32.mrf.mxu1  ;;  %2576 = vrcp.f32 %v1215_v22 }
 0x1f5   :  { %v2565_v57 = vpop.eup %2564  ;;  %v1326_v28 = vmul.f32 %v2563_v23, %v3638_v44  ;;  %v2067_v4 = vmul.f32 -1.442695, %v3702_v14 }
 0x1f6   :  { %v1216_v11 = vadd.f32 1.0, %v2565_v57  ;;  %v1054_v15 = vpop.f32.mrf.mxu1 }
 0x1f7   :  { %2578 = vpow2.f32 %v2067_v4  ;;  %v3712_v58 = vadd.f32 %v1054_v15, %v3434_v21  ;;  %v1351_v31 = vpack.c.bf16 %v1326_v28, %v1325_v59 }
 0x1f8   :  { %2580 = vrcp.f32 %v1216_v11  ;;  %v3714_v49 = vpop.f32.mrf.mxu1  ;;  %v2567_v33 = vpop.eup %2566 }
 0x1f9   :  { %v2068_v0 = vmul.f32 -1.442695, %v3712_v58  ;;  %v2569_v30 = vpop.eup %2568  ;;  %v1217_v45 = vadd.f32 1.0, %v2567_v33 }
 0x1fa   :  { %2224 = vmatmul.mubr.bf16.gmra.mxu1 %v1351_v31  ;;  %v1058_v44 = vpop.f32.mrf.mxu1  ;;  %v1327_v25 = vmul.f32 %v2569_v30, %v3648_v48 }
 0x1fb   :  { %2582 = vpow2.f32 %v2068_v0  ;;  %v3718_v19 = vadd.f32 %v1058_v44, %v3434_v21  ;;  %2227 = vmatprep.mubr.msk.bf16.mxu1 %vm2625_vm4, %v2624_v26 }
 0x1fc   :  { %v2571_v61 = vpop.eup %2570  ;;  %v3722_v2 = vpop.f32.mrf.mxu1  ;;  %2584 = vrcp.f32 %v1217_v45 }
 0x1fd   :  { %v2573_v22 = vpop.eup %2572  ;;  %v1328_v23 = vmul.f32 %v2571_v61, %v3654_v10  ;;  %v2069_v57 = vmul.f32 -1.442695, %v3718_v19 }
 0x1fe   :  { %v1218_v59 = vadd.f32 1.0, %v2573_v22  ;;  %v1064_v28 = vpop.f32.mrf.mxu1 }
 0x1ff   :  { %2586 = vpow2.f32 %v2069_v57  ;;  %v1065_v4 = vadd.f32 %v1064_v28, %v3434_v21  ;;  %v1352_v11 = vpack.c.bf16 %v1328_v23, %v1327_v25 }
 0x200   :  { %v2575_v15 = vpop.eup %2574  ;;  %2588 = vrcp.f32 %v1218_v59  ;;  %v3728_v31 = vpop.f32.mrf.mxu1 }
 0x201   :  { %v1219_v33 = vadd.f32 1.0, %v2575_v15  ;;  %v2070_v0 = vmul.f32 -1.442695, %v1065_v4  ;;  %v2577_v48 = vpop.eup %2576 }
 0x202   :  { %2228 = vmatmul.mubr.bf16.gmra.mxu1 %v1352_v11  ;;  %v1068_v44 = vpop.f32.mrf.mxu1  ;;  %v1329_v25 = vmul.f32 %v2577_v48, %v3664_v52 }
 0x203   :  { %v1069_v10 = vadd.f32 %v1068_v44, %v3434_v21  ;;  %2231 = vmatprep.mubr.msk.bf16.mxu1 %vm2625_vm4, %v2624_v26  ;;  %2590 = vpow2.f32 %v2070_v0 }
 0x204   :  { %v2579_v30 = vpop.eup %2578  ;;  %2592 = vrcp.f32 %v1219_v33 }
 0x205   :  { %v2581_v45 = vpop.eup %2580  ;;  %v1220_v61 = vadd.f32 1.0, %v2579_v30  ;;  %v2071_v22 = vmul.f32 -1.442695, %v1069_v10 }
 0x206   :  { %v1330_v23 = vmul.f32 %v2581_v45, %v3670_v40 }
 0x207   :  { %2594 = vrcp.f32 %v1220_v61 }
 0x208   :  { %v2583_v57 = vpop.eup %2582  ;;  %2596 = vpow2.f32 %v2071_v22  ;;  %v1353_v59 = vpack.c.bf16 %v1330_v23, %v1329_v25 }
 0x209   :  { %v1221_v28 = vadd.f32 1.0, %v2583_v57  ;;  %v2585_v21 = vpop.eup %2584 }
 0x20a   :  { %2232 = vmatmul.mubr.bf16.gmra.mxu1 %v1353_v59  ;;  %v1331_v0 = vmul.f32 %v2585_v21, %v3680_v12 }
 0x20b   :  { %2235 = vmatprep.mubr.msk.bf16.mxu1 %vm2625_vm4, %v2624_v26  ;;  %2598 = vrcp.f32 %v1221_v28 }
 0x20c   :  { %v2587_v11 = vpop.eup %2586 }
 0x20d   :  { %v2589_v15 = vpop.eup %2588  ;;  %v1222_v33 = vadd.f32 1.0, %v2587_v11 }
 0x20e   :  { %v1332_v52 = vmul.f32 %v2589_v15, %v3686_v24 }
 0x20f   :  { %2600 = vrcp.f32 %v1222_v33 }
 0x210   :  { %v1354_v40 = vpack.c.bf16 %v1332_v52, %v1331_v0  ;;  %v2591_v44 = vpop.eup %2590  ;;  %v3749_v0 = vpop.f32.mrf.mxu1 }
 0x211   :  { %v2593_v48 = vpop.eup %2592  ;;  %v1223_v30 = vadd.f32 1.0, %v2591_v44 }
 0x212   :  { %2236 = vmatmul.mubr.bf16.gmra.mxu1 %v1354_v40  ;;  %v1333_v22 = vmul.f32 %v2593_v48, %v3696_v1 }
 0x213   :  { %2239 = vmatprep.mubr.msk.bf16.mxu1 %vm2625_vm4, %v2624_v26  ;;  %2602 = vrcp.f32 %v1223_v30 }
 0x214   :  { %v2595_v45 = vpop.eup %2594 }
 0x215   :  { %v2597_v61 = vpop.eup %2596  ;;  %v1334_v25 = vmul.f32 %v2595_v45, %v3702_v14 }
 0x216   :  { %v1224_v23 = vadd.f32 1.0, %v2597_v61 }
 0x217   :  { %v1355_v12 = vpack.c.bf16 %v1334_v25, %v1333_v22  ;;  %v897_v22 = vadd.f32 %v3448_v62, %v2836_v13  ;;  %v911_v62 = vadd.f32 %v3466_v3, %v2836_v13 }
 0x218   :  { %2604 = vrcp.f32 %v1224_v23  ;;  %v2599_v24 = vpop.eup %2598 }
 0x219   :  { %v1335_v59 = vmul.f32 %v2599_v24, %v3712_v58  ;;  %v887_v58 = vadd.f32 %v3439_v47, %v2836_v13  ;;  %v901_v47 = vadd.f32 %v3454_v29, %v2836_v13 }
 0x21a   :  { %2240 = vmatmul.mubr.bf16.gmra.mxu1 %v1355_v12 }
 0x21b   :  { %2243 = vmatprep.mubr.msk.bf16.mxu1 %vm2625_vm4, %v2624_v26 }
 0x21c   :  { %v2601_v57 = vpop.eup %2600 }
 0x21d   :  { %v1336_v28 = vmul.f32 %v2601_v57, %v3718_v19  ;;  %v891_v19 = vadd.f32 %v3443_v53, %v2836_v13 }
 0x21f   :  { %v1356_v21 = vpack.c.bf16 %v1336_v28, %v1335_v59  ;;  %v907_v28 = vadd.f32 %v3460_v56, %v2836_v13  ;;  %v921_v56 = vadd.f32 %v3478_v5, %v2836_v13 }
 0x220   :  { %v2603_v11 = vpop.eup %2602 }
 0x221   :  { %v1337_v14 = vmul.f32 %v2603_v11, %v1065_v4 }
 0x222   :  { %2244 = vmatmul.mubr.bf16.gmra.mxu1 %v1356_v21 }
 0x223   :  { %2247 = vmatprep.mubr.msk.bf16.mxu1 %vm2625_vm4, %v2624_v26 }
 0x225   :  { %v2605_v1 = vpop.eup %2604 }
 0x226   :  { %v1338_v15 = vmul.f32 %v2605_v1, %v1069_v10 }
 0x228   :  { %v1357_v33 = vpack.c.bf16 %v1338_v15, %v1337_v14 }
 0x22a   :  { %2248 = vmatmul.mubr.bf16.gmra.mxu1 %v1357_v33 }
 0x259   :  { %v1456_v52 = vpop.f32.mrf.mxu1 }
 0x25a   :  { %v1607_v48 = vmul.f32 %v1456_v52, %v887_v58  ;;  %v917_v52 = vadd.f32 %v3472_v34, %v2836_v13  ;;  %v931_v34 = vadd.f32 %v3490_v27, %v2836_v13 }
 0x25b   :  { %v2177_v40 = vpop.f32.mrf.mxu1 }
 0x25d   :  { %v1459_v44 = vpop.f32.mrf.mxu1 }
 0x25e   :  { %v1608_v30 = vmul.f32 %v1459_v44, %v891_v19 }
 0x25f   :  { %v2178_v45 = vpop.f32.mrf.mxu1 }
 0x260   :  { %v1645_v61 = vpack.c.bf16 %v1608_v30, %v1607_v48  ;;  %v927_v45 = vadd.f32 %v3484_v16, %v2836_v13  ;;  %v941_v16 = vadd.f32 %v3505_v39, %v2836_v13 }
 0x261   :  { %v1464_v4 = vpop.f32.mrf.mxu1 }
 0x262   :  { %2266 = vmatmul.mubr.msk.bf16.vlgmr.msra.gmra.mxu0 %vm1720_vm5, %v1645_v61  ;;  %v1609_v25 = vmul.f32 %v1464_v4, %v897_v22 }
 0x263   :  { %v2181_v10 = vpop.f32.mrf.mxu1  ;;  %2269 = vmatprep.mubr.msk.bf16.mxu0 %vm2625_vm4, %v2624_v26 }
 0x265   :  { %v1467_v53 = vpop.f32.mrf.mxu1 }
 0x266   :  { %v1610_v23 = vmul.f32 %v1467_v53, %v901_v47 }
 0x267   :  { %v2182_v12 = vpop.f32.mrf.mxu1 }
 0x268   :  { %v1646_v24 = vpack.c.bf16 %v1610_v23, %v1609_v25  ;;  %v937_v25 = vadd.f32 %v3497_v9, %v2836_v13  ;;  %v951_v9 = vadd.f32 %v3521_v41, %v2836_v13 }
 0x26a   :  { %v1472_v57 = vpop.f32.mrf.mxu1  ;;  %2270 = vmatmul.mubr.msk.bf16.gmra.mxu0 %vm1720_vm5, %v1646_v24 }
 0x26b   :  { %2273 = vmatprep.mubr.msk.bf16.mxu0 %vm2625_vm4, %v2624_v26  ;;  %v1611_v29 = vmul.f32 %v1472_v57, %v907_v28 }
 0x26c   :  { %v2185_v59 = vpop.f32.mrf.mxu1 }
 0x26e   :  { %v1475_v21 = vpop.f32.mrf.mxu1 }
 0x26f   :  { %v1612_v11 = vmul.f32 %v1475_v21, %v911_v62  ;;  %v947_v62 = vadd.f32 %v3513_v63, %v2836_v13  ;;  %v961_v63 = vadd.f32 %v3544_v43, %v2836_v13 }
 0x270   :  { %v2186_v1 = vpop.f32.mrf.mxu1 }
 0x271   :  { %v1647_v14 = vpack.c.bf16 %v1612_v11, %v1611_v29 }
 0x272   :  { %v1480_v15 = vpop.f32.mrf.mxu1 }
 0x273   :  { %2274 = vmatmul.mubr.msk.bf16.gmra.mxu0 %vm1720_vm5, %v1647_v14  ;;  %v1613_v3 = vmul.f32 %v1480_v15, %v917_v52 }
 0x274   :  { %v2189_v33 = vpop.f32.mrf.mxu1  ;;  %2277 = vmatprep.mubr.msk.bf16.mxu0 %vm2625_vm4, %v2624_v26 }
 0x275   :  { %v957_v33 = vadd.f32 %v3532_v35, %v2836_v13  ;;  %v971_v35 = vadd.f32 %v3568_v32, %v2836_v13 }
 0x276   :  { %v1483_v40 = vpop.f32.mrf.mxu1 }
 0x277   :  { %v1614_v58 = vmul.f32 %v1483_v40, %v921_v56 }
 0x278   :  { %v2190_v19 = vpop.f32.mrf.mxu1 }
 0x279   :  { %v1648_v44 = vpack.c.bf16 %v1614_v58, %v1613_v3 }
 0x27a   :  { %v1488_v48 = vpop.f32.mrf.mxu1 }
 0x27b   :  { %2278 = vmatmul.mubr.msk.bf16.gmra.mxu0 %vm1720_vm5, %v1648_v44  ;;  %v1615_v5 = vmul.f32 %v1488_v48, %v927_v45  ;;  %v967_v44 = vadd.f32 %v3556_v50, %v2836_v13 }
 0x27c   :  { %v2193_v30 = vpop.f32.mrf.mxu1  ;;  %2281 = vmatprep.mubr.msk.bf16.mxu0 %vm2625_vm4, %v2624_v26 }
 0x27e   :  { %v1491_v61 = vpop.f32.mrf.mxu1 }
 0x27f   :  { %v1616_v4 = vmul.f32 %v1491_v61, %v931_v34  ;;  %v980_v61 = vpop.f32.mrf.mxu0 }
 0x280   :  { %v2194_v10 = vpop.f32.mrf.mxu1  ;;  %v981_v50 = vadd.f32 %v980_v61, %v2836_v13 }
 0x281   :  { %v1649_v22 = vpack.c.bf16 %v1616_v4, %v1615_v5  ;;  %v977_v10 = vadd.f32 %v3580_v51, %v2836_v13  ;;  %v991_v51 = vadd.f32 %v3610_v54, %v2836_v13 }
 0x282   :  { %v1496_v47 = vpop.f32.mrf.mxu1 }
 0x283   :  { %2282 = vmatmul.mubr.msk.bf16.gmra.mxu0 %vm1720_vm5, %v1649_v22  ;;  %v1617_v27 = vmul.f32 %v1496_v47, %v937_v25 }
 0x284   :  { %v2197_v53 = vpop.f32.mrf.mxu1  ;;  %2285 = vmatprep.mubr.msk.bf16.mxu0 %vm2625_vm4, %v2624_v26 }
 0x286   :  { %v1499_v23 = vpop.f32.mrf.mxu1 }
 0x287   :  { %v1618_v12 = vmul.f32 %v1499_v23, %v941_v16 }
 0x288   :  { %v2198_v24 = vpop.f32.mrf.mxu1 }
 0x289   :  { %v1650_v57 = vpack.c.bf16 %v1618_v12, %v1617_v27  ;;  %v987_v27 = vadd.f32 %v3602_v46, %v2836_v13  ;;  %v1001_v46 = vadd.f32 %v3626_v18, %v2836_v13 }
 0x28a   :  { %v1504_v59 = vpop.f32.mrf.mxu1 }
 0x28b   :  { %2286 = vmatmul.mubr.msk.bf16.gmra.mxu0 %vm1720_vm5, %v1650_v57  ;;  %v1619_v39 = vmul.f32 %v1504_v59, %v947_v62 }
 0x28c   :  { %v2201_v28 = vpop.f32.mrf.mxu1  ;;  %2289 = vmatprep.mubr.msk.bf16.mxu0 %vm2625_vm4, %v2624_v26 }
 0x28e   :  { %v1507_v21 = vpop.f32.mrf.mxu1 }
 0x28f   :  { %v1620_v29 = vmul.f32 %v1507_v21, %v951_v9  ;;  %v997_v21 = vadd.f32 %v3618_v20, %v2836_v13  ;;  %v1011_v20 = vadd.f32 %v3642_v38, %v2836_v13 }
 0x290   :  { %v2202_v11 = vpop.f32.mrf.mxu1 }
 0x291   :  { %v1651_v1 = vpack.c.bf16 %v1620_v29, %v1619_v39 }
 0x292   :  { %v1512_v14 = vpop.f32.mrf.mxu1 }
 0x293   :  { %2290 = vmatmul.mubr.msk.bf16.gmra.mxu0 %vm1720_vm5, %v1651_v1  ;;  %v1621_v41 = vmul.f32 %v1512_v14, %v957_v33  ;;  %v1007_v33 = vadd.f32 %v3634_v60, %v2836_v13  ;;  %v1021_v60 = vadd.f32 %v3658_v42, %v2836_v13 }
 0x294   :  { %v2205_v15 = vpop.f32.mrf.mxu1  ;;  %2293 = vmatprep.mubr.msk.bf16.mxu0 %vm2625_vm4, %v2624_v26 }
 0x296   :  { %v1515_v52 = vpop.f32.mrf.mxu1 }
 0x297   :  { %v1622_v56 = vmul.f32 %v1515_v52, %v961_v63 }
 0x298   :  { %v2206_v40 = vpop.f32.mrf.mxu1 }
 0x299   :  { %v1652_v3 = vpack.c.bf16 %v1622_v56, %v1621_v41 }
 0x29a   :  { %v1520_v58 = vpop.f32.mrf.mxu1 }
 0x29b   :  { %2294 = vmatmul.mubr.msk.bf16.gmra.mxu0 %vm1720_vm5, %v1652_v3  ;;  %v1623_v43 = vmul.f32 %v1520_v58, %v967_v44  ;;  %v1017_v58 = vadd.f32 %v3650_v17, %v2836_v13  ;;  %v1031_v17 = vadd.f32 %v3674_v8, %v2836_v13 }
 0x29c   :  { %v2209_v19 = vpop.f32.mrf.mxu1  ;;  %2297 = vmatprep.mubr.msk.bf16.mxu0 %vm2625_vm4, %v2624_v26 }
 0x29e   :  { %v1523_v48 = vpop.f32.mrf.mxu1 }
 0x29f   :  { %v1624_v30 = vmul.f32 %v1523_v48, %v971_v35 }
 0x2a0   :  { %v2210_v45 = vpop.f32.mrf.mxu1 }
 0x2a1   :  { %v1653_v34 = vpack.c.bf16 %v1624_v30, %v1623_v43  ;;  %v1027_v45 = vadd.f32 %v3666_v6, %v2836_v13  ;;  %v1041_v6 = vadd.f32 %v3690_v37, %v2836_v13 }
 0x2a2   :  { %v1528_v5 = vpop.f32.mrf.mxu1 }
 0x2a3   :  { %2298 = vmatmul.mubr.msk.bf16.gmra.mxu0 %vm1720_vm5, %v1653_v34  ;;  %v1625_v32 = vmul.f32 %v1528_v5, %v977_v10 }
 0x2a4   :  { %v2213_v4 = vpop.f32.mrf.mxu1  ;;  %2301 = vmatprep.mubr.msk.bf16.mxu0 %vm2625_vm4, %v2624_v26 }
 0x2a6   :  { %v1531_v22 = vpop.f32.mrf.mxu1 }
 0x2a7   :  { %v1626_v47 = vmul.f32 %v1531_v22, %v981_v50  ;;  %v1037_v22 = vadd.f32 %v3682_v55, %v2836_v13  ;;  %v1051_v55 = vadd.f32 %v3706_v36, %v2836_v13 }
 0x2a8   :  { %v2214_v53 = vpop.f32.mrf.mxu1 }
 0x2a9   :  { %v1654_v25 = vpack.c.bf16 %v1626_v47, %v1625_v32 }
 0x2aa   :  { %v1536_v16 = vpop.f32.mrf.mxu1 }
 0x2ab   :  { %2302 = vmatmul.mubr.msk.bf16.gmra.mxu0 %vm1720_vm5, %v1654_v25  ;;  %v1627_v24 = vmul.f32 %v1536_v16, %v987_v27  ;;  %v1047_v27 = vadd.f32 %v3698_v7, %v2836_v13  ;;  %v1061_v7 = vadd.f32 %v3722_v2, %v2836_v13 }
 0x2ac   :  { %v2217_v23 = vpop.f32.mrf.mxu1  ;;  %2305 = vmatprep.mubr.msk.bf16.mxu0 %vm2625_vm4, %v2624_v26 }
 0x2ae   :  { %v1539_v12 = vpop.f32.mrf.mxu1 }
 0x2af   :  { %v1628_v57 = vmul.f32 %v1539_v12, %v991_v51 }
 0x2b0   :  { %v2218_v59 = vpop.f32.mrf.mxu1 }
 0x2b1   :  { %v1655_v28 = vpack.c.bf16 %v1628_v57, %v1627_v24 }
 0x2b2   :  { %v1544_v62 = vpop.f32.mrf.mxu1 }
 0x2b3   :  { %2306 = vmatmul.mubr.msk.bf16.gmra.mxu0 %vm1720_vm5, %v1655_v28  ;;  %v1629_v54 = vmul.f32 %v1544_v62, %v997_v21  ;;  %v1057_v62 = vadd.f32 %v3714_v49, %v2836_v13  ;;  %v1071_v49 = vadd.f32 %v3749_v0, %v2836_v13 }
 0x2b4   :  { %v2221_v9 = vpop.f32.mrf.mxu1  ;;  %2309 = vmatprep.mubr.msk.bf16.mxu0 %vm2625_vm4, %v2624_v26 }
 0x2b6   :  { %v1547_v39 = vpop.f32.mrf.mxu1 }
 0x2b7   :  { %v1630_v29 = vmul.f32 %v1547_v39, %v1001_v46 }
 0x2b8   :  { %v2222_v11 = vpop.f32.mrf.mxu1 }
 0x2b9   :  { %v1656_v1 = vpack.c.bf16 %v1630_v29, %v1629_v54  ;;  %v1067_v11 = vadd.f32 %v3728_v31, %v2836_v13 }
 0x2ba   :  { %v1552_v14 = vpop.f32.mrf.mxu1 }
 0x2bb   :  { %2310 = vmatmul.mubr.msk.bf16.gmra.mxu0 %vm1720_vm5, %v1656_v1  ;;  %v1631_v18 = vmul.f32 %v1552_v14, %v1007_v33 }
 0x2bc   :  { %v2225_v15 = vpop.f32.mrf.mxu1  ;;  %2313 = vmatprep.mubr.msk.bf16.mxu0 %vm2625_vm4, %v2624_v26 }
 0x2be   :  { %v1555_v63 = vpop.f32.mrf.mxu1 }
 0x2bf   :  { %v1632_v52 = vmul.f32 %v1555_v63, %v1011_v20 }
 0x2c0   :  { %v2226_v41 = vpop.f32.mrf.mxu1 }
 0x2c1   :  { %v1657_v56 = vpack.c.bf16 %v1632_v52, %v1631_v18 }
 0x2c2   :  { %v1560_v40 = vpop.f32.mrf.mxu1 }
 0x2c3   :  { %2314 = vmatmul.mubr.msk.bf16.gmra.mxu0 %vm1720_vm5, %v1657_v56  ;;  %v1633_v38 = vmul.f32 %v1560_v40, %v1017_v58 }
 0x2c4   :  { %v2229_v3 = vpop.f32.mrf.mxu1  ;;  %2317 = vmatprep.mubr.msk.bf16.mxu0 %vm2625_vm4, %v2624_v26 }
 0x2c6   :  { %v1563_v19 = vpop.f32.mrf.mxu1 }
 0x2c7   :  { %v1634_v44 = vmul.f32 %v1563_v19, %v1021_v60 }
 0x2c8   :  { %v2230_v35 = vpop.f32.mrf.mxu1 }
 0x2c9   :  { %v1658_v48 = vpack.c.bf16 %v1634_v44, %v1633_v38 }
 0x2ca   :  { %v1568_v43 = vpop.f32.mrf.mxu1 }
 0x2cb   :  { %2318 = vmatmul.mubr.msk.bf16.gmra.mxu0 %vm1720_vm5, %v1658_v48  ;;  %v1635_v42 = vmul.f32 %v1568_v43, %v1027_v45 }
 0x2cc   :  { %v2233_v30 = vpop.f32.mrf.mxu1  ;;  %2321 = vmatprep.mubr.msk.bf16.mxu0 %vm2625_vm4, %v2624_v26 }
 0x2ce   :  { %v1571_v34 = vpop.f32.mrf.mxu1 }
 0x2cf   :  { %v1636_v61 = vmul.f32 %v1571_v34, %v1031_v17 }
 0x2d0   :  { %v2234_v5 = vpop.f32.mrf.mxu1 }
 0x2d1   :  { %v1659_v4 = vpack.c.bf16 %v1636_v61, %v1635_v42 }
 0x2d2   :  { %v1576_v10 = vpop.f32.mrf.mxu1 }
 0x2d3   :  { %2322 = vmatmul.mubr.msk.bf16.gmra.mxu0 %vm1720_vm5, %v1659_v4  ;;  %v1637_v8 = vmul.f32 %v1576_v10, %v1037_v22 }
 0x2d4   :  { %v2237_v50 = vpop.f32.mrf.mxu1  ;;  %2325 = vmatprep.mubr.msk.bf16.mxu0 %vm2625_vm4, %v2624_v26 }
 0x2d6   :  { %v1579_v32 = vpop.f32.mrf.mxu1 }
 0x2d7   :  { %v1638_v47 = vmul.f32 %v1579_v32, %v1041_v6 }
 0x2d8   :  { %v2238_v53 = vpop.f32.mrf.mxu1 }
 0x2d9   :  { %v1660_v25 = vpack.c.bf16 %v1638_v47, %v1637_v8 }
 0x2da   :  { %v1584_v16 = vpop.f32.mrf.mxu1 }
 0x2db   :  { %2326 = vmatmul.mubr.msk.bf16.gmra.mxu0 %vm1720_vm5, %v1660_v25  ;;  %v1639_v37 = vmul.f32 %v1584_v16, %v1047_v27 }
 0x2dc   :  { %v2241_v23 = vpop.f32.mrf.mxu1  ;;  %2329 = vmatprep.mubr.msk.bf16.mxu0 %vm2625_vm4, %v2624_v26 }
 0x2de   :  { %v1587_v51 = vpop.f32.mrf.mxu1 }
 0x2df   :  { %v1640_v12 = vmul.f32 %v1587_v51, %v1051_v55 }
 0x2e0   :  { %v2242_v24 = vpop.f32.mrf.mxu1 }
 0x2e1   :  { %v1661_v57 = vpack.c.bf16 %v1640_v12, %v1639_v37 }
 0x2e2   :  { %v1592_v59 = vpop.f32.mrf.mxu1 }
 0x2e3   :  { %2330 = vmatmul.mubr.msk.bf16.gmra.mxu0 %vm1720_vm5, %v1661_v57  ;;  %v1641_v36 = vmul.f32 %v1592_v59, %v1057_v62 }
 0x2e4   :  { %v2245_v28 = vpop.f32.mrf.mxu1  ;;  %2333 = vmatprep.mubr.msk.bf16.mxu0 %vm2625_vm4, %v2624_v26 }
 0x2e6   :  { %v1595_v9 = vpop.f32.mrf.mxu1 }
 0x2e7   :  { %v1642_v21 = vmul.f32 %v1595_v9, %v1061_v7 }
 0x2e8   :  { %v2246_v46 = vpop.f32.mrf.mxu1 }
 0x2e9   :  { %v1662_v39 = vpack.c.bf16 %v1642_v21, %v1641_v36 }
 0x2ea   :  { %v1600_v54 = vpop.f32.mrf.mxu1 }
 0x2eb   :  { %2334 = vmatmul.mubr.msk.bf16.gmra.mxu0 %vm1720_vm5, %v1662_v39  ;;  %v1643_v2 = vmul.f32 %v1600_v54, %v1067_v11 }
 0x2ec   :  { %v2249_v29 = vpop.f32.mrf.mxu1  ;;  %2337 = vmatprep.mubr.msk.bf16.mxu0 %vm2625_vm4, %v2624_v26 }
 0x2ee   :  { %v1603_v1 = vpop.f32.mrf.mxu1 }
 0x2ef   :  { %v1644_v14 = vmul.f32 %v1603_v1, %v1071_v49 }
 0x2f0   :  { %v2250_v15 = vpop.f32.mrf.mxu1 }
 0x2f1   :  { %v1663_v33 = vpack.c.bf16 %v1644_v14, %v1643_v2 }
 0x2f3   :  { %2338 = vmatmul.mubr.msk.bf16.gmra.mxu0 %vm1720_vm5, %v1663_v33 }
 0x322   :  { %v1812_v20 = vpop.f32.mrf.mxu0 }
 0x323   :  { %1964 = vst.msk [vmem:[%s4038_s5] sm:$0xff] %vm1963_vm6, %v1812_v20 }
 0x324   :  { %v2267_v26 = vpop.f32.mrf.mxu0 }
 0x326   :  { %v1815_v63 = vpop.f32.mrf.mxu0 }
 0x327   :  { %1965 = vst.msk [vmem:[%s4038_s5 + $0x8] sm:$0xff] %vm1963_vm6, %v1815_v63 }
 0x328   :  { %v2268_v13 = vpop.f32.mrf.mxu0 }
 0x32a   :  { %v1820_v31 = vpop.f32.mrf.mxu0 }
 0x32b   :  { %1966 = vst.msk [vmem:[%s4038_s5 + $0x10] sm:$0xff] %vm1963_vm6, %v1820_v31 }
 0x32c   :  { %v2271_v0 = vpop.f32.mrf.mxu0 }
 0x32e   :  { %v1823_v18 = vpop.f32.mrf.mxu0 }
 0x32f   :  { %1967 = vst.msk [vmem:[%s4038_s5 + $0x18] sm:$0xff] %vm1963_vm6, %v1823_v18 }
 0x330   :  { %v2272_v52 = vpop.f32.mrf.mxu0 }
 0x333   :  { %v1828_v41 = vpop.f32.mrf.mxu0 }
 0x334   :  { %1968 = vst.msk [vmem:[%s4038_s5 + $0x20] sm:$0xff] %vm1963_vm6, %v1828_v41 }
 0x335   :  { %v2275_v56 = vpop.f32.mrf.mxu0 }
 0x337   :  { %v1831_v40 = vpop.f32.mrf.mxu0 }
 0x338   :  { %1969 = vst.msk [vmem:[%s4038_s5 + $0x28] sm:$0xff] %vm1963_vm6, %v1831_v40 }
 0x339   :  { %v2276_v3 = vpop.f32.mrf.mxu0 }
 0x33b   :  { %v1836_v58 = vpop.f32.mrf.mxu0 }
 0x33c   :  { %1970 = vst.msk [vmem:[%s4038_s5 + $0x30] sm:$0xff] %vm1963_vm6, %v1836_v58 }
 0x33d   :  { %v2279_v60 = vpop.f32.mrf.mxu0 }
 0x33f   :  { %v1839_v19 = vpop.f32.mrf.mxu0 }
 0x340   :  { %1971 = vst.msk [vmem:[%s4038_s5 + $0x38] sm:$0xff] %vm1963_vm6, %v1839_v19 }
 0x341   :  { %v2280_v38 = vpop.f32.mrf.mxu0 }
 0x343   :  { %v1844_v44 = vpop.f32.mrf.mxu0 }
 0x344   :  { %1972 = vst.msk [vmem:[%s4038_s5 + $0x40] sm:$0xff] %vm1963_vm6, %v1844_v44 }
 0x345   :  { %v2283_v35 = vpop.f32.mrf.mxu0 }
 0x347   :  { %v1847_v48 = vpop.f32.mrf.mxu0 }
 0x348   :  { %1973 = vst.msk [vmem:[%s4038_s5 + $0x48] sm:$0xff] %vm1963_vm6, %v1847_v48 }
 0x349   :  { %v2284_v43 = vpop.f32.mrf.mxu0 }
 0x34b   :  { %v1852_v30 = vpop.f32.mrf.mxu0 }
 0x34c   :  { %1974 = vst.msk [vmem:[%s4038_s5 + $0x50] sm:$0xff] %vm1963_vm6, %v1852_v30 }
 0x34d   :  { %v2287_v45 = vpop.f32.mrf.mxu0 }
 0x34f   :  { %v1855_v17 = vpop.f32.mrf.mxu0 }
 0x350   :  { %1975 = vst.msk [vmem:[%s4038_s5 + $0x58] sm:$0xff] %vm1963_vm6, %v1855_v17 }
 0x351   :  { %v2288_v34 = vpop.f32.mrf.mxu0 }
 0x353   :  { %v1860_v42 = vpop.f32.mrf.mxu0 }
 0x354   :  { %1976 = vst.msk [vmem:[%s4038_s5 + $0x60] sm:$0xff] %vm1963_vm6, %v1860_v42 }
 0x355   :  { %v2291_v61 = vpop.f32.mrf.mxu0 }
 0x357   :  { %v1863_v5 = vpop.f32.mrf.mxu0 }
 0x358   :  { %1977 = vst.msk [vmem:[%s4038_s5 + $0x68] sm:$0xff] %vm1963_vm6, %v1863_v5 }
 0x359   :  { %v2292_v4 = vpop.f32.mrf.mxu0 }
 0x35b   :  { %v1868_v10 = vpop.f32.mrf.mxu0 }
 0x35c   :  { %1978 = vst.msk [vmem:[%s4038_s5 + $0x70] sm:$0xff] %vm1963_vm6, %v1868_v10 }
 0x35d   :  { %v2295_v50 = vpop.f32.mrf.mxu0 }
 0x35f   :  { %v1871_v22 = vpop.f32.mrf.mxu0 }
 0x360   :  { %1979 = vst.msk [vmem:[%s4038_s5 + $0x78] sm:$0xff] %vm1963_vm6, %v1871_v22 }
 0x361   :  { %v2296_v6 = vpop.f32.mrf.mxu0 }
 0x363   :  { %v1876_v32 = vpop.f32.mrf.mxu0 }
 0x364   :  { %1980 = vst.msk [vmem:[%s4038_s5 + $0x80] sm:$0xff] %vm1963_vm6, %v1876_v32 }
 0x365   :  { %v2299_v8 = vpop.f32.mrf.mxu0 }
 0x367   :  { %v1879_v47 = vpop.f32.mrf.mxu0 }
 0x368   :  { %1981 = vst.msk [vmem:[%s4038_s5 + $0x88] sm:$0xff] %vm1963_vm6, %v1879_v47 }
 0x369   :  { %v2300_v53 = vpop.f32.mrf.mxu0 }
 0x36b   :  { %v1884_v25 = vpop.f32.mrf.mxu0 }
 0x36c   :  { %1982 = vst.msk [vmem:[%s4038_s5 + $0x90] sm:$0xff] %vm1963_vm6, %v1884_v25 }
 0x36d   :  { %v2303_v16 = vpop.f32.mrf.mxu0 }
 0x36f   :  { %v1887_v23 = vpop.f32.mrf.mxu0 }
 0x370   :  { %1983 = vst.msk [vmem:[%s4038_s5 + $0x98] sm:$0xff] %vm1963_vm6, %v1887_v23 }
 0x371   :  { %v2304_v27 = vpop.f32.mrf.mxu0 }
 0x373   :  { %v1892_v55 = vpop.f32.mrf.mxu0 }
 0x374   :  { %1984 = vst.msk [vmem:[%s4038_s5 + $0xa0] sm:$0xff] %vm1963_vm6, %v1892_v55 }
 0x375   :  { %v2307_v51 = vpop.f32.mrf.mxu0 }
 0x377   :  { %v1895_v37 = vpop.f32.mrf.mxu0 }
 0x378   :  { %1985 = vst.msk [vmem:[%s4038_s5 + $0xa8] sm:$0xff] %vm1963_vm6, %v1895_v37 }
 0x379   :  { %v2308_v12 = vpop.f32.mrf.mxu0 }
 0x37b   :  { %v1900_v24 = vpop.f32.mrf.mxu0 }
 0x37c   :  { %1986 = vst.msk [vmem:[%s4038_s5 + $0xb0] sm:$0xff] %vm1963_vm6, %v1900_v24 }
 0x37d   :  { %v2311_v57 = vpop.f32.mrf.mxu0 }
 0x37f   :  { %v1903_v59 = vpop.f32.mrf.mxu0 }
 0x380   :  { %1987 = vst.msk [vmem:[%s4038_s5 + $0xb8] sm:$0xff] %vm1963_vm6, %v1903_v59 }
 0x381   :  { %v2312_v28 = vpop.f32.mrf.mxu0 }
 0x383   :  { %v1908_v62 = vpop.f32.mrf.mxu0 }
 0x384   :  { %1988 = vst.msk [vmem:[%s4038_s5 + $0xc0] sm:$0xff] %vm1963_vm6, %v1908_v62 }
 0x385   :  { %v2315_v7 = vpop.f32.mrf.mxu0 }
 0x387   :  { %v1911_v9 = vpop.f32.mrf.mxu0 }
 0x388   :  { %1989 = vst.msk [vmem:[%s4038_s5 + $0xc8] sm:$0xff] %vm1963_vm6, %v1911_v9 }
 0x389   :  { %v2316_v36 = vpop.f32.mrf.mxu0 }
 0x38b   :  { %v1916_v21 = vpop.f32.mrf.mxu0 }
 0x38c   :  { %1990 = vst.msk [vmem:[%s4038_s5 + $0xd0] sm:$0xff] %vm1963_vm6, %v1916_v21 }
 0x38d   :  { %v2319_v46 = vpop.f32.mrf.mxu0 }
 0x38f   :  { %v1919_v39 = vpop.f32.mrf.mxu0 }
 0x390   :  { %1991 = vst.msk [vmem:[%s4038_s5 + $0xd8] sm:$0xff] %vm1963_vm6, %v1919_v39 }
 0x391   :  { %v2320_v54 = vpop.f32.mrf.mxu0 }
 0x393   :  { %v1924_v29 = vpop.f32.mrf.mxu0 }
 0x394   :  { %1992 = vst.msk [vmem:[%s4038_s5 + $0xe0] sm:$0xff] %vm1963_vm6, %v1924_v29 }
 0x395   :  { %v2323_v11 = vpop.f32.mrf.mxu0 }
 0x397   :  { %v1927_v49 = vpop.f32.mrf.mxu0 }
 0x398   :  { %1993 = vst.msk [vmem:[%s4038_s5 + $0xe8] sm:$0xff] %vm1963_vm6, %v1927_v49 }
 0x399   :  { %v2324_v1 = vpop.f32.mrf.mxu0 }
 0x39b   :  { %v1932_v2 = vpop.f32.mrf.mxu0 }
 0x39c   :  { %1994 = vst.msk [vmem:[%s4038_s5 + $0xf0] sm:$0xff] %vm1963_vm6, %v1932_v2 }
 0x39d   :  { %v2327_v14 = vpop.f32.mrf.mxu0 }
 0x39f   :  { %v1935_v15 = vpop.f32.mrf.mxu0 }
 0x3a0   :  { %1995 = vst.msk [vmem:[%s4038_s5 + $0xf8] sm:$0xff] %vm1963_vm6, %v1935_v15 }
 0x3a1   :  { %v2328_v33 = vpop.f32.mrf.mxu0 }
 0x3a3   :  { %v1940_v20 = vpop.f32.mrf.mxu0 }
 0x3a4   :  { %1996 = vst.msk [vmem:[%s4038_s5 + $0x100] sm:$0xff] %vm1963_vm6, %v1940_v20 }
 0x3a5   :  { %v2331_v26 = vpop.f32.mrf.mxu0 }
 0x3a7   :  { %v1943_v63 = vpop.f32.mrf.mxu0 }
 0x3a8   :  { %1997 = vst.msk [vmem:[%s4038_s5 + $0x108] sm:$0xff] %vm1963_vm6, %v1943_v63 }
 0x3a9   :  { %v2332_v13 = vpop.f32.mrf.mxu0 }
 0x3ab   :  { %v1948_v31 = vpop.f32.mrf.mxu0 }
 0x3ac   :  { %1998 = vst.msk [vmem:[%s4038_s5 + $0x110] sm:$0xff] %vm1963_vm6, %v1948_v31 }
 0x3ad   :  { %v2335_v0 = vpop.f32.mrf.mxu0 }
 0x3af   :  { %v1951_v18 = vpop.f32.mrf.mxu0 }
 0x3b0   :  { %1999 = vst.msk [vmem:[%s4038_s5 + $0x118] sm:$0xff] %vm1963_vm6, %v1951_v18 }
 0x3b1   :  { %v2336_v52 = vpop.f32.mrf.mxu0 }
 0x3b3   :  { %v1956_v41 = vpop.f32.mrf.mxu0 }
 0x3b4   :  { %2000 = vst.msk [vmem:[%s4038_s5 + $0x120] sm:$0xff] %vm1963_vm6, %v1956_v41 }
 0x3b5   :  { %v2339_v56 = vpop.f32.mrf.mxu0 }
 0x3b7   :  { %v1959_v40 = vpop.f32.mrf.mxu0 }
 0x3b8   :  { %2001 = vst.msk [vmem:[%s4038_s5 + $0x128] sm:$0xff] %vm1963_vm6, %v1959_v40 }
 0x3b9   :  { %v2340_v3 = vpop.f32.mrf.mxu0 }

</bundles_post_ra>
